<compile_context>
chip_gen: v5e
topology: v5e:2x2
jax: 0.10.0
libtpu: 0.0.40
codegen_flags: <defaults>
</compile_context>

<pallas_src>
import functools
import math

import jax
import jax.numpy as jnp
from jax.experimental import pallas as pl
from jax.experimental.pallas import tpu as pltpu


# ----------------------------- hardware gating -------------------------------

@functools.lru_cache(maxsize=None)
def _vmem_capacity_bytes():
    try:
        return int(pltpu.get_tpu_info().vmem_capacity_bytes)
    except Exception:
        return 128 * 1024 * 1024


@functools.lru_cache(maxsize=None)
def _tile_caps():
    """Generation-gated matmul tile caps (bm, bn, bk) and a scoped-VMEM limit."""
    cap = _vmem_capacity_bytes()
    if cap >= 100 * 1024 * 1024:            # v5e / v6e: 128 MiB physical VMEM
        return 512, 1024, 2048, 64 * 1024 * 1024
    return 256, 512, 1024, 32 * 1024 * 1024  # v7x: 64 MiB physical VMEM


# ------------------------------ small helpers --------------------------------

def _round_up(x, m):
    return -(-x // m) * m


def _pick_block(dim, cap):
    """Return (block, padded_dim); prefer padding-free blocks that divide `dim`."""
    if dim <= cap:
        return dim, dim                              # full dim: always legal, no pad
    start = (cap // 128) * 128
    for b in range(start, 127, -128):                # largest 128-multiple divisor
        if dim % b == 0:
            return b, dim
    return cap, _round_up(dim, cap)                  # fallback (activations only)


def _pad2(x, shape):
    pads = [(0, t - s) for s, t in zip(x.shape, shape)]
    if all(p == (0, 0) for p in pads):
        return x
    return jnp.pad(x, pads)


def _gelu(x):
    # TODO(synk): HF RoBERTa uses exact erf-GELU; tanh approximation used here.
    return jax.nn.gelu(x, approximate=True)


# ------------------------- fused tiled matmul kernel --------------------------

def _mm_kernel(x_ref, w_ref, b_ref, *rest, activation, ln, has_res,
               nan_to_zero, single_k, eps):
    idx = 0
    res_ref = g_ref = bt_ref = None
    if has_res:
        res_ref = rest[idx]; idx += 1
    if ln:
        g_ref, bt_ref = rest[idx], rest[idx + 1]; idx += 2
    o_ref = rest[idx]; idx += 1
    acc_ref = None if single_k else rest[idx]

    def epilogue(acc):
        y = acc + b_ref[...]
        if activation == "gelu":
            y = _gelu(y)
        elif activation == "tanh":
            y = jnp.tanh(y)
        if has_res:
            y = y + res_ref[...].astype(jnp.float32)
        if ln:
            mu = jnp.mean(y, axis=-1, keepdims=True)
            yc = y - mu
            var = jnp.mean(yc * yc, axis=-1, keepdims=True)
            y = yc * jax.lax.rsqrt(var + eps) * g_ref[...] + bt_ref[...]
        o_ref[...] = y.astype(o_ref.dtype)

    x = x_ref[...]
    if nan_to_zero:
        x = jnp.where(jnp.isnan(x), jnp.zeros_like(x), x)

    if single_k:
        epilogue(jnp.dot(x, w_ref[...], preferred_element_type=jnp.float32))
    else:
        k = pl.program_id(2)

        @pl.when(k == 0)
        def _init():
            acc_ref[...] = jnp.zeros_like(acc_ref)

        acc_ref[...] += jnp.dot(x, w_ref[...], preferred_element_type=jnp.float32)

        @pl.when(k == pl.num_programs(2) - 1)
        def _finalize():
            epilogue(acc_ref[...])


def fused_matmul(x, w, b, *, activation="none", residual=None, ln_params=None,
                 nan_to_zero=False, out_dtype=None, eps=1e-5):
    """y = act(x @ W + b) [+ residual] [-> LayerNorm].  W is (K, N), pre-shaped."""
    M, K = x.shape
    Kw, N = w.shape
    assert K == Kw
    if out_dtype is None:
        out_dtype = x.dtype
    ln = ln_params is not None
    has_res = residual is not None
    assert not (has_res and not ln), "residual only supported together with LayerNorm"

    bm_cap, bn_cap, bk_cap, vmem_limit = _tile_caps()
    bm, Mp = _pick_block(M, bm_cap)
    bk, Kp = _pick_block(K, bk_cap)
    if ln:
        bn, Np = N, N                 # LayerNorm needs the full row in one block
    else:
        bn, Np = _pick_block(N, bn_cap)

    # Weights are pre-shaped in prep_params -> only (cheap) activation M-padding here.
    xp = _pad2(x, (Mp, Kp))
    wp = _pad2(w, (Kp, Np))
    bp = _pad2(b.astype(jnp.float32).reshape(1, -1), (1, Np))

    single_k = (Kp == bk)             # K fits one block: no scratch, no pl.when

    in_specs = [
        pl.BlockSpec((bm, bk), lambda i, j, k: (i, k)),
        pl.BlockSpec((bk, bn), lambda i, j, k: (k, j)),
        pl.BlockSpec((1, bn), lambda i, j, k: (0, j)),
    ]
    args = [xp, wp, bp]
    if has_res:
        in_specs.append(pl.BlockSpec((bm, bn), lambda i, j, k: (i, j)))
        args.append(_pad2(residual, (Mp, Np)))
    if ln:
        g, beta = ln_params
        in_specs += [pl.BlockSpec((1, bn), lambda i, j, k: (0, j)),
                     pl.BlockSpec((1, bn), lambda i, j, k: (0, j))]
        args += [g.astype(jnp.float32).reshape(1, N),
                 beta.astype(jnp.float32).reshape(1, N)]

    scratch = [] if single_k else [pltpu.VMEM((bm, bn), jnp.float32)]

    out = pl.pallas_call(
        functools.partial(_mm_kernel, activation=activation, ln=ln, has_res=has_res,
                          nan_to_zero=nan_to_zero, single_k=single_k, eps=eps),
        out_shape=jax.ShapeDtypeStruct((Mp, Np), out_dtype),
        grid=(Mp // bm, Np // bn, Kp // bk),
        in_specs=in_specs,
        out_specs=pl.BlockSpec((bm, bn), lambda i, j, k: (i, j)),
        scratch_shapes=scratch,
        compiler_params=pltpu.CompilerParams(
            dimension_semantics=("parallel", "parallel", "arbitrary"),
            vmem_limit_bytes=vmem_limit),
    )(*args)
    if (Mp, Np) != (M, N):
        out = out[:M, :N]
    return out


# ----------------- fused embedding-sum + LayerNorm kernel --------------------

def _embed_ln_kernel(we_ref, pe_ref, g_ref, b_ref, o_ref, *, eps):
    x = we_ref[0].astype(jnp.float32) + pe_ref[...].astype(jnp.float32)   # (S, H)
    mu = jnp.mean(x, axis=-1, keepdims=True)
    xc = x - mu
    var = jnp.mean(xc * xc, axis=-1, keepdims=True)
    y = xc * jax.lax.rsqrt(var + eps) * g_ref[...] + b_ref[...]
    o_ref[0] = y.astype(o_ref.dtype)


def embed_layernorm(we, pe, gamma, beta, eps=1e-5):
    """we: (B, S, H) word embeddings; pe: (S, H) positional(+type) embeddings."""
    B, S, H = we.shape
    _, _, _, vmem_limit = _tile_caps()
    return pl.pallas_call(
        functools.partial(_embed_ln_kernel, eps=eps),
        out_shape=jax.ShapeDtypeStruct((B, S, H), we.dtype),
        grid=(B,),
        in_specs=[pl.BlockSpec((1, S, H), lambda b: (b, 0, 0)),
                  pl.BlockSpec((S, H), lambda b: (0, 0)),
                  pl.BlockSpec((1, H), lambda b: (0, 0)),
                  pl.BlockSpec((1, H), lambda b: (0, 0))],
        out_specs=pl.BlockSpec((1, S, H), lambda b: (b, 0, 0)),
        compiler_params=pltpu.CompilerParams(
            dimension_semantics=("parallel",), vmem_limit_bytes=vmem_limit),
    )(we, pe, gamma.astype(jnp.float32).reshape(1, H),
      beta.astype(jnp.float32).reshape(1, H))


# ------------------------------ attention kernel ------------------------------

def _attn_kernel(q_ref, k_ref, v_ref, am_ref, *rest, prefix_lm):
    if prefix_lm:
        pm_ref, pmc_ref, o_ref = rest
    else:
        (o_ref,) = rest

    q = q_ref[0, 0]                                   # (tq, d); scale folded into Wq
    k = k_ref[0, 0]                                   # (S, d)
    v = v_ref[0, 0]                                   # (S, d)
    am = am_ref[0]                                    # (1, S) key mask (f32)
    if prefix_lm:
        pm_r = pm_ref[0]                              # (1, S)
        pm_c = pmc_ref[0]                             # (tq, 1)
        mask2d = pm_c * pm_r + (1.0 - pm_c) * am      # (tq, S)
        bias = (1.0 - mask2d) * -1e9
    else:
        bias = (1.0 - am) * -1e9                      # (1, S) broadcasts over queries

    # TODO(synk): for very long sequences also tile the key axis with online softmax
    # instead of keeping the full (S, d) K/V and (tq, S) score block resident.
    s = jax.lax.dot_general(q, k, (((1,), (1,)), ((), ())),
                            preferred_element_type=jnp.float32)          # (tq, S)
    s = s + bias
    m = jnp.max(s, axis=-1, keepdims=True)
    p = jnp.exp(s - m)
    denom = jnp.sum(p, axis=-1, keepdims=True)
    p = p * pl.reciprocal(denom, approx=True)
    o_ref[0, 0] = jnp.dot(p.astype(v.dtype), v,
                          preferred_element_type=jnp.float32).astype(o_ref.dtype)


def _pick_seq_tile(S, cap=512):
    if S <= cap:
        return S
    t = (cap // 8) * 8
    while t >= 8:
        if S % t == 0:
            return t
        t -= 8
    return S


def attention(q, k, v, am_row, pm_row, pm_col, *, prefix_lm, out_dtype=None):
    """q/k/v: (B, nH, S, d) head-major. am_row: (B, 1, S) f32. Returns (B, nH, S, d)."""
    B, nH, S, d = q.shape
    if out_dtype is None:
        out_dtype = q.dtype
    tq = _pick_seq_tile(S)
    nQ = S // tq
    _, _, _, vmem_limit = _tile_caps()

    inputs = [q, k, v, am_row]
    in_specs = [pl.BlockSpec((1, 1, tq, d), lambda b, h, qi: (b, h, qi, 0)),
                pl.BlockSpec((1, 1, S, d), lambda b, h, qi: (b, h, 0, 0)),
                pl.BlockSpec((1, 1, S, d), lambda b, h, qi: (b, h, 0, 0)),
                pl.BlockSpec((1, 1, S), lambda b, h, qi: (b, 0, 0))]
    if prefix_lm:
        inputs += [pm_row, pm_col]
        in_specs += [pl.BlockSpec((1, 1, S), lambda b, h, qi: (b, 0, 0)),
                     pl.BlockSpec((1, tq, 1), lambda b, h, qi: (b, qi, 0))]

    return pl.pallas_call(
        functools.partial(_attn_kernel, prefix_lm=prefix_lm),
        out_shape=jax.ShapeDtypeStruct((B, nH, S, d), out_dtype),
        grid=(B, nH, nQ),
        in_specs=in_specs,
        out_specs=pl.BlockSpec((1, 1, tq, d), lambda b, h, qi: (b, h, qi, 0)),
        compiler_params=pltpu.CompilerParams(
            dimension_semantics=("parallel", "parallel", "parallel"),
            vmem_limit_bytes=vmem_limit),
    )(*inputs)


# ------------------------------ model (glue) ----------------------------------

class Config:
    vocab_size = 64
    hidden = 32
    heads = 4
    intermediate = 64
    layers = 2
    max_position_embeddings = 40
    pad_id = 1
    bos_id = 0
    eos_id = 2
    mask_id = 63
    prefix_lm = False


def init_params(key, cfg):
    keys = iter(jax.random.split(key, 6 + 4 * cfg.layers))
    wdt = jnp.bfloat16   # bf16 weights / activations, f32 accumulation + LN stats

    def w(shape, scale=0.02):
        return (scale * jax.random.normal(next(keys), shape, jnp.float32)).astype(wdt)

    H, FF, V = cfg.hidden, cfg.intermediate, cfg.vocab_size
    params = {
        "word_emb": w((V, H)),
        "pos_emb": w((cfg.max_position_embeddings, H)),
        "type_emb": w((1, H)),
        "emb_ln_g": jnp.ones((H,), jnp.float32),
        "emb_ln_b": jnp.zeros((H,), jnp.float32),
        "head_dense_w": w((H, H)),
        "head_dense_b": jnp.zeros((H,), jnp.float32),
        "head_ln_g": jnp.ones((H,), jnp.float32),
        "head_ln_b": jnp.zeros((H,), jnp.float32),
        "head_decoder_b": jnp.zeros((V,), jnp.float32),
        "layers": [],
    }
    for _ in range(cfg.layers):
        params["layers"].append({
            "w_qkv": w((H, 3 * H)), "b_qkv": jnp.zeros((3 * H,), jnp.float32),
            "wo": w((H, H)), "bo": jnp.zeros((H,), jnp.float32),
            "ln1_g": jnp.ones((H,), jnp.float32), "ln1_b": jnp.zeros((H,), jnp.float32),
            "w1": w((H, FF)), "b1": jnp.zeros((FF,), jnp.float32),
            "w2": w((FF, H)), "b2": jnp.zeros((H,), jnp.float32),
            "ln2_g": jnp.ones((H,), jnp.float32), "ln2_b": jnp.zeros((H,), jnp.float32),
        })
    return params


def prep_params(params, cfg):
    """One-time (outside jit) parameter preparation:
       - fold 1/sqrt(head_dim) into the Q columns of w_qkv / b_qkv,
       - fold the token-type embedding into the positional embedding,
       - pre-transpose + vocab-pad the tied decoder weight once."""
    H, nH, V = cfg.hidden, cfg.heads, cfg.vocab_size
    d = H // nH
    scale = 1.0 / math.sqrt(d)

    p = dict(params)
    layers = []
    for lyr in params["layers"]:
        l = dict(lyr)
        w_qkv = lyr["w_qkv"].astype(jnp.float32).at[:, :H].multiply(scale)
        b_qkv = lyr["b_qkv"].astype(jnp.float32).at[:H].multiply(scale)
        l["w_qkv"] = w_qkv.astype(lyr["w_qkv"].dtype)
        l["b_qkv"] = b_qkv
        layers.append(l)
    p["layers"] = layers

    p["pos_plus_type_emb"] = (params["pos_emb"].astype(jnp.float32)
                              + params["type_emb"][0].astype(jnp.float32)
                              ).astype(params["pos_emb"].dtype)

    Vp = V if V <= 512 else _round_up(V, 256)
    dec_w = jnp.zeros((H, Vp), params["word_emb"].dtype).at[:, :V].set(
        params["word_emb"].T)
    dec_b = jnp.zeros((Vp,), jnp.float32).at[:V].set(
        params["head_decoder_b"].astype(jnp.float32))
    p["decoder_w"] = dec_w
    p["decoder_b"] = dec_b
    return p


def dd_xlmr_forward(params, cfg, prev_output_tokens, partial_mask, attention_mask=None):
    B, S = prev_output_tokens.shape
    H, nH, V = cfg.hidden, cfg.heads, cfg.vocab_size
    d = H // nH

    if attention_mask is None:
        attention_mask = (prev_output_tokens != cfg.pad_id).astype(jnp.int32)

    # --- roberta embeddings: gather in XLA; (word + pos + type) sum fused into LN ---
    we = params["word_emb"][prev_output_tokens]                          # (B,S,H) bf16
    pe = params["pos_plus_type_emb"][cfg.pad_id + 1: cfg.pad_id + 1 + S]  # (S,H)
    h = embed_layernorm(we, pe, params["emb_ln_g"], params["emb_ln_b"])
    h = h.reshape(B * S, H)

    am = attention_mask.astype(jnp.float32).reshape(B, 1, S)
    if cfg.prefix_lm:
        pm_row = partial_mask.astype(jnp.float32).reshape(B, 1, S)
        pm_col = partial_mask.astype(jnp.float32).reshape(B, S, 1)
    else:
        pm_row = pm_col = None

    # --- encoder layers ---
    for lyr in params["layers"]:
        qkv = fused_matmul(h, lyr["w_qkv"], lyr["b_qkv"])                 # (B*S, 3H)
        # one head-major relayout per layer so the kernel sees contiguous (S, d) heads
        qkv5 = qkv.reshape(B, S, 3, nH, d).transpose(2, 0, 3, 1, 4)       # (3,B,nH,S,d)
        ctx = attention(qkv5[0], qkv5[1], qkv5[2], am, pm_row, pm_col,
                        prefix_lm=cfg.prefix_lm)                          # (B,nH,S,d)
        ctx = ctx.transpose(0, 2, 1, 3).reshape(B * S, H)
        h = fused_matmul(ctx, lyr["wo"], lyr["bo"],
                         residual=h, ln_params=(lyr["ln1_g"], lyr["ln1_b"]))
        ff = fused_matmul(h, lyr["w1"], lyr["b1"], activation="gelu")
        h = fused_matmul(ff, lyr["w2"], lyr["b2"],
                         residual=h, ln_params=(lyr["ln2_g"], lyr["ln2_b"]))

    # --- lm_head: NaN fixup + dense + gelu + LayerNorm fused into one kernel ---
    x = fused_matmul(h, params["head_dense_w"], params["head_dense_b"],
                     activation="gelu",
                     ln_params=(params["head_ln_g"], params["head_ln_b"]),
                     nan_to_zero=True)
    # tied decoder: pre-transposed, pre-padded (H, V_pad) weight prepared once
    logits = fused_matmul(x, params["decoder_w"], params["decoder_b"],
                          out_dtype=jnp.float32)
    logits = logits[:, :V]
    return logits.reshape(B, S, V)


# ---------------------------------- main ---------------------------------------

if __name__ == "__main__":
    cfg = Config()
    key = jax.random.PRNGKey(0)
    pkey, dkey = jax.random.split(key)
    params = prep_params(init_params(pkey, cfg), cfg)

    B, S = 2, 8
    prev_output_tokens = jax.random.randint(
        dkey, (B, S), 3, cfg.vocab_size - 1, dtype=jnp.int32)
    prev_output_tokens = prev_output_tokens.at[:, 0].set(cfg.bos_id)
    prev_output_tokens = prev_output_tokens.at[0, S - 1].set(cfg.eos_id)
    prev_output_tokens = prev_output_tokens.at[1, 6:].set(cfg.pad_id)  # trailing padding
    partial_mask = jnp.zeros((B, S), dtype=bool)

    forward = jax.jit(lambda p, t, m: dd_xlmr_forward(p, cfg, t, m))
    logits = forward(params, prev_output_tokens, partial_mask)
    logits = jax.block_until_ready(logits)
    assert logits.shape == (B, S, cfg.vocab_size)
    assert bool(jnp.all(jnp.isfinite(logits)))
    print("KERNEL_OK")
</pallas_src>

<mosaic_0001>
module attributes {stable_mosaic.version = 11 : i64} {
  func.func @_embed_ln_kernel(%arg0: i32, %arg1: memref<1x8x32xbf16, #tpu.memory_space<vmem>>, %arg2: memref<8x32xbf16, #tpu.memory_space<vmem>>, %arg3: memref<1x32xf32, #tpu.memory_space<vmem>>, %arg4: memref<1x32xf32, #tpu.memory_space<vmem>>, %arg5: memref<1x8x32xbf16, #tpu.memory_space<vmem>>) attributes {dimension_semantics = [#tpu.dimension_semantics<parallel>], iteration_bounds = array<i64: 2>, scalar_prefetch = 0 : i64, scratch_operands = 0 : i64, tpu.core_type = #tpu.core_type<tc>, window_params = [{transform_indices = @transform_0, window_bounds = array<i64: 1, 8, 32>}, {pipeline_mode = #tpu.pipeline_mode<synchronous>, transform_indices = @transform_1, window_bounds = array<i64: 8, 32>}, {pipeline_mode = #tpu.pipeline_mode<synchronous>, transform_indices = @transform_2, window_bounds = array<i64: 1, 32>}, {pipeline_mode = #tpu.pipeline_mode<synchronous>, transform_indices = @transform_3, window_bounds = array<i64: 1, 32>}, {transform_indices = @transform_4, window_bounds = array<i64: 1, 8, 32>}]} {
    %c0 = arith.constant 0 : index
    %c0_0 = arith.constant 0 : index
    %c0_1 = arith.constant 0 : index
    %0 = vector.load %arg1[%c0, %c0_0, %c0_1] : memref<1x8x32xbf16, #tpu.memory_space<vmem>>, vector<1x8x32xbf16>
    %1 = vector.shape_cast %0 : vector<1x8x32xbf16> to vector<8x32xbf16>
    %2 = arith.extf %1 : vector<8x32xbf16> to vector<8x32xf32>
    %c0_2 = arith.constant 0 : index
    %c0_3 = arith.constant 0 : index
    %3 = vector.load %arg2[%c0_2, %c0_3] : memref<8x32xbf16, #tpu.memory_space<vmem>>, vector<8x32xbf16>
    %4 = arith.extf %3 : vector<8x32xbf16> to vector<8x32xf32>
    %5 = arith.addf %2, %4 : vector<8x32xf32>
    %cst = arith.constant dense<0.000000e+00> : vector<8xf32>
    %6 = vector.multi_reduction <add>, %5, %cst [1] : vector<8x32xf32> to vector<8xf32>
    %7 = vector.shape_cast %6 : vector<8xf32> to vector<8x1xf32>
    %cst_4 = arith.constant 3.200000e+01 : f32
    %8 = vector.broadcast %cst_4 : f32 to vector<8x1xf32>
    %9 = arith.divf %7, %8 : vector<8x1xf32>
    %10 = vector.broadcast %9 : vector<8x1xf32> to vector<8x32xf32>
    %11 = arith.subf %5, %10 : vector<8x32xf32>
    %12 = arith.mulf %11, %11 : vector<8x32xf32>
    %cst_5 = arith.constant dense<0.000000e+00> : vector<8xf32>
    %13 = vector.multi_reduction <add>, %12, %cst_5 [1] : vector<8x32xf32> to vector<8xf32>
    %14 = vector.shape_cast %13 : vector<8xf32> to vector<8x1xf32>
    %cst_6 = arith.constant 3.200000e+01 : f32
    %15 = vector.broadcast %cst_6 : f32 to vector<8x1xf32>
    %16 = arith.divf %14, %15 : vector<8x1xf32>
    %cst_7 = arith.constant 9.99999974E-6 : f32
    %17 = vector.broadcast %cst_7 : f32 to vector<8x1xf32>
    %18 = arith.addf %16, %17 : vector<8x1xf32>
    %19 = math.rsqrt %18 : vector<8x1xf32>
    %20 = vector.broadcast %19 : vector<8x1xf32> to vector<8x32xf32>
    %21 = arith.mulf %11, %20 : vector<8x32xf32>
    %c0_8 = arith.constant 0 : index
    %c0_9 = arith.constant 0 : index
    %22 = vector.load %arg3[%c0_8, %c0_9] : memref<1x32xf32, #tpu.memory_space<vmem>>, vector<1x32xf32>
    %23 = vector.broadcast %22 : vector<1x32xf32> to vector<8x32xf32>
    %24 = arith.mulf %21, %23 : vector<8x32xf32>
    %c0_10 = arith.constant 0 : index
    %c0_11 = arith.constant 0 : index
    %25 = vector.load %arg4[%c0_10, %c0_11] : memref<1x32xf32, #tpu.memory_space<vmem>>, vector<1x32xf32>
    %26 = vector.broadcast %25 : vector<1x32xf32> to vector<8x32xf32>
    %27 = arith.addf %24, %26 : vector<8x32xf32>
    %28 = arith.truncf %27 : vector<8x32xf32> to vector<8x32xbf16>
    %c0_12 = arith.constant 0 : index
    %c0_13 = arith.constant 0 : index
    %c0_14 = arith.constant 0 : index
    %29 = vector.load %arg5[%c0_12, %c0_13, %c0_14] : memref<1x8x32xbf16, #tpu.memory_space<vmem>>, vector<1x8x32xbf16>
    %30 = vector.shape_cast %29 : vector<1x8x32xbf16> to vector<8x32xbf16>
    %31 = vector.shape_cast %28 : vector<8x32xbf16> to vector<1x8x32xbf16>
    tpu.vector_store %arg5[%c0_12, %c0_13, %c0_14], %31 {strides = array<i32>} : memref<1x8x32xbf16, #tpu.memory_space<vmem>>, vector<1x8x32xbf16>,
    return
  }
  func.func @transform_0(%arg0: i32) -> (i32, i32, i32) {
    %c0_i32 = arith.constant 0 : i32
    %c0_i32_0 = arith.constant 0 : i32
    %c0_i32_1 = arith.constant 0 : i32
    return %arg0, %c0_i32, %c0_i32_0 : i32, i32, i32
  }
  func.func @transform_1(%arg0: i32) -> (i32, i32) {
    %c0_i32 = arith.constant 0 : i32
    %c0_i32_0 = arith.constant 0 : i32
    %c0_i32_1 = arith.constant 0 : i32
    return %c0_i32, %c0_i32_0 : i32, i32
  }
  func.func @transform_2(%arg0: i32) -> (i32, i32) {
    %c0_i32 = arith.constant 0 : i32
    %c0_i32_0 = arith.constant 0 : i32
    %c0_i32_1 = arith.constant 0 : i32
    return %c0_i32, %c0_i32_0 : i32, i32
  }
  func.func @transform_3(%arg0: i32) -> (i32, i32) {
    %c0_i32 = arith.constant 0 : i32
    %c0_i32_0 = arith.constant 0 : i32
    %c0_i32_1 = arith.constant 0 : i32
    return %c0_i32, %c0_i32_0 : i32, i32
  }
  func.func @transform_4(%arg0: i32) -> (i32, i32, i32) {
    %c0_i32 = arith.constant 0 : i32
    %c0_i32_0 = arith.constant 0 : i32
    %c0_i32_1 = arith.constant 0 : i32
    return %arg0, %c0_i32, %c0_i32_0 : i32, i32, i32
  }
}

module attributes {stable_mosaic.version = 11 : i64} {
  func.func @_mm_kernel(%arg0: i32, %arg1: i32, %arg2: i32, %arg3: memref<16x32xbf16, #tpu.memory_space<vmem>>, %arg4: memref<32x96xbf16, #tpu.memory_space<vmem>>, %arg5: memref<1x96xf32, #tpu.memory_space<vmem>>, %arg6: memref<16x96xbf16, #tpu.memory_space<vmem>>) attributes {dimension_semantics = [#tpu.dimension_semantics<parallel>, #tpu.dimension_semantics<parallel>, #tpu.dimension_semantics<arbitrary>], iteration_bounds = array<i64: 1, 1, 1>, scalar_prefetch = 0 : i64, scratch_operands = 0 : i64, tpu.core_type = #tpu.core_type<tc>, window_params = [{transform_indices = @transform_0, window_bounds = array<i64: 16, 32>}, {transform_indices = @transform_1, window_bounds = array<i64: 32, 96>}, {transform_indices = @transform_2, window_bounds = array<i64: 1, 96>}, {transform_indices = @transform_3, window_bounds = array<i64: 16, 96>}]} {
    %c0 = arith.constant 0 : index
    %c0_0 = arith.constant 0 : index
    %0 = vector.load %arg3[%c0, %c0_0] : memref<16x32xbf16, #tpu.memory_space<vmem>>, vector<16x32xbf16>
    %c0_1 = arith.constant 0 : index
    %c0_2 = arith.constant 0 : index
    %1 = vector.load %arg4[%c0_1, %c0_2] : memref<32x96xbf16, #tpu.memory_space<vmem>>, vector<32x96xbf16>
    %cst = arith.constant dense<0.000000e+00> : vector<16x96xf32>
    %2 = tpu.matmul %0, %1, %cst {dimension_numbers = #tpu.dot_dimension_numbers<[1], [0], [0], [1], [0, 0, 1, 1], [], []>} : vector<16x32xbf16>, vector<32x96xbf16>, vector<16x96xf32> -> vector<16x96xf32>
    %c0_3 = arith.constant 0 : index
    %c0_4 = arith.constant 0 : index
    %3 = vector.load %arg5[%c0_3, %c0_4] : memref<1x96xf32, #tpu.memory_space<vmem>>, vector<1x96xf32>
    %4 = vector.broadcast %3 : vector<1x96xf32> to vector<16x96xf32>
    %5 = arith.addf %2, %4 : vector<16x96xf32>
    %6 = arith.truncf %5 : vector<16x96xf32> to vector<16x96xbf16>
    %c0_5 = arith.constant 0 : index
    %c0_6 = arith.constant 0 : index
    %7 = vector.load %arg6[%c0_5, %c0_6] : memref<16x96xbf16, #tpu.memory_space<vmem>>, vector<16x96xbf16>
    tpu.vector_store %arg6[%c0_5, %c0_6], %6 {strides = array<i32>} : memref<16x96xbf16, #tpu.memory_space<vmem>>, vector<16x96xbf16>,
    return
  }
  func.func @transform_0(%arg0: i32, %arg1: i32, %arg2: i32) -> (i32, i32) {
    %c0_i32 = arith.constant 0 : i32
    return %arg0, %arg2 : i32, i32
  }
  func.func @transform_1(%arg0: i32, %arg1: i32, %arg2: i32) -> (i32, i32) {
    %c0_i32 = arith.constant 0 : i32
    return %arg2, %arg1 : i32, i32
  }
  func.func @transform_2(%arg0: i32, %arg1: i32, %arg2: i32) -> (i32, i32) {
    %c0_i32 = arith.constant 0 : i32
    %c0_i32_0 = arith.constant 0 : i32
    return %c0_i32, %arg1 : i32, i32
  }
  func.func @transform_3(%arg0: i32, %arg1: i32, %arg2: i32) -> (i32, i32) {
    %c0_i32 = arith.constant 0 : i32
    return %arg0, %arg1 : i32, i32
  }
}

module attributes {stable_mosaic.version = 11 : i64} {
  func.func @_attn_kernel(%arg0: i32, %arg1: i32, %arg2: i32, %arg3: memref<1x1x8x8xbf16, #tpu.memory_space<vmem>>, %arg4: memref<1x1x8x8xbf16, #tpu.memory_space<vmem>>, %arg5: memref<1x1x8x8xbf16, #tpu.memory_space<vmem>>, %arg6: memref<1x1x8xf32, #tpu.memory_space<vmem>>, %arg7: memref<1x1x8x8xbf16, #tpu.memory_space<vmem>>) attributes {dimension_semantics = [#tpu.dimension_semantics<parallel>, #tpu.dimension_semantics<parallel>, #tpu.dimension_semantics<parallel>], iteration_bounds = array<i64: 2, 4, 1>, scalar_prefetch = 0 : i64, scratch_operands = 0 : i64, tpu.core_type = #tpu.core_type<tc>, window_params = [{transform_indices = @transform_0, window_bounds = array<i64: 1, 1, 8, 8>}, {transform_indices = @transform_1, window_bounds = array<i64: 1, 1, 8, 8>}, {transform_indices = @transform_2, window_bounds = array<i64: 1, 1, 8, 8>}, {transform_indices = @transform_3, window_bounds = array<i64: 1, 1, 8>}, {transform_indices = @transform_4, window_bounds = array<i64: 1, 1, 8, 8>}]} {
    %c0 = arith.constant 0 : index
    %c0_0 = arith.constant 0 : index
    %c0_1 = arith.constant 0 : index
    %c0_2 = arith.constant 0 : index
    %0 = vector.load %arg3[%c0, %c0_0, %c0_1, %c0_2] : memref<1x1x8x8xbf16, #tpu.memory_space<vmem>>, vector<1x1x8x8xbf16>
    %1 = vector.shape_cast %0 : vector<1x1x8x8xbf16> to vector<8x8xbf16>
    %c0_3 = arith.constant 0 : index
    %c0_4 = arith.constant 0 : index
    %c0_5 = arith.constant 0 : index
    %c0_6 = arith.constant 0 : index
    %2 = vector.load %arg4[%c0_3, %c0_4, %c0_5, %c0_6] : memref<1x1x8x8xbf16, #tpu.memory_space<vmem>>, vector<1x1x8x8xbf16>
    %3 = vector.shape_cast %2 : vector<1x1x8x8xbf16> to vector<8x8xbf16>
    %c0_7 = arith.constant 0 : index
    %c0_8 = arith.constant 0 : index
    %c0_9 = arith.constant 0 : index
    %c0_10 = arith.constant 0 : index
    %4 = vector.load %arg5[%c0_7, %c0_8, %c0_9, %c0_10] : memref<1x1x8x8xbf16, #tpu.memory_space<vmem>>, vector<1x1x8x8xbf16>
    %5 = vector.shape_cast %4 : vector<1x1x8x8xbf16> to vector<8x8xbf16>
    %c0_11 = arith.constant 0 : index
    %c0_12 = arith.constant 0 : index
    %c0_13 = arith.constant 0 : index
    %6 = vector.load %arg6[%c0_11, %c0_12, %c0_13] : memref<1x1x8xf32, #tpu.memory_space<vmem>>, vector<1x1x8xf32>
    %7 = vector.shape_cast %6 : vector<1x1x8xf32> to vector<1x8xf32>
    %cst = arith.constant 1.000000e+00 : f32
    %8 = vector.broadcast %cst : f32 to vector<1x8xf32>
    %9 = arith.subf %8, %7 : vector<1x8xf32>
    %cst_14 = arith.constant -1.000000e+09 : f32
    %10 = vector.broadcast %cst_14 : f32 to vector<1x8xf32>
    %11 = arith.mulf %9, %10 : vector<1x8xf32>
    %cst_15 = arith.constant dense<0.000000e+00> : vector<8x8xf32>
    %12 = tpu.matmul %1, %3, %cst_15 {dimension_numbers = #tpu.dot_dimension_numbers<[1], [1], [0], [0], [0, 0, 1, 0], [], []>} : vector<8x8xbf16>, vector<8x8xbf16>, vector<8x8xf32> -> vector<8x8xf32>
    %13 = vector.broadcast %11 : vector<1x8xf32> to vector<8x8xf32>
    %14 = arith.addf %12, %13 : vector<8x8xf32>
    %cst_16 = arith.constant dense<0xFF800000> : vector<8xf32>
    %15 = vector.multi_reduction <maximumf>, %14, %cst_16 [1] : vector<8x8xf32> to vector<8xf32>
    %16 = vector.shape_cast %15 : vector<8xf32> to vector<8x1xf32>
    %17 = vector.broadcast %16 : vector<8x1xf32> to vector<8x8xf32>
    %18 = arith.subf %14, %17 : vector<8x8xf32>
    %19 = math.exp %18 : vector<8x8xf32>
    %cst_17 = arith.constant dense<0.000000e+00> : vector<8xf32>
    %20 = vector.multi_reduction <add>, %19, %cst_17 [1] : vector<8x8xf32> to vector<8xf32>
    %21 = vector.shape_cast %20 : vector<8xf32> to vector<8x1xf32>
    %22 = tpu.reciprocal %21 {approx = true} : vector<8x1xf32> -> vector<8x1xf32>
    %23 = vector.broadcast %22 : vector<8x1xf32> to vector<8x8xf32>
    %24 = arith.mulf %19, %23 : vector<8x8xf32>
    %25 = arith.truncf %24 : vector<8x8xf32> to vector<8x8xbf16>
    %cst_18 = arith.constant dense<0.000000e+00> : vector<8x8xf32>
    %26 = tpu.matmul %25, %5, %cst_18 {dimension_numbers = #tpu.dot_dimension_numbers<[1], [0], [0], [1], [0, 0, 1, 1], [], []>} : vector<8x8xbf16>, vector<8x8xbf16>, vector<8x8xf32> -> vector<8x8xf32>
    %27 = arith.truncf %26 : vector<8x8xf32> to vector<8x8xbf16>
    %c0_19 = arith.constant 0 : index
    %c0_20 = arith.constant 0 : index
    %c0_21 = arith.constant 0 : index
    %c0_22 = arith.constant 0 : index
    %28 = vector.load %arg7[%c0_19, %c0_20, %c0_21, %c0_22] : memref<1x1x8x8xbf16, #tpu.memory_space<vmem>>, vector<1x1x8x8xbf16>
    %29 = vector.shape_cast %28 : vector<1x1x8x8xbf16> to vector<8x8xbf16>
    %30 = vector.shape_cast %27 : vector<8x8xbf16> to vector<1x1x8x8xbf16>
    tpu.vector_store %arg7[%c0_19, %c0_20, %c0_21, %c0_22], %30 {strides = array<i32>} : memref<1x1x8x8xbf16, #tpu.memory_space<vmem>>, vector<1x1x8x8xbf16>,
    return
  }
  func.func @transform_0(%arg0: i32, %arg1: i32, %arg2: i32) -> (i32, i32, i32, i32) {
    %c0_i32 = arith.constant 0 : i32
    %c0_i32_0 = arith.constant 0 : i32
    return %arg0, %arg1, %arg2, %c0_i32 : i32, i32, i32, i32
  }
  func.func @transform_1(%arg0: i32, %arg1: i32, %arg2: i32) -> (i32, i32, i32, i32) {
    %c0_i32 = arith.constant 0 : i32
    %c0_i32_0 = arith.constant 0 : i32
    %c0_i32_1 = arith.constant 0 : i32
    return %arg0, %arg1, %c0_i32, %c0_i32_0 : i32, i32, i32, i32
  }
  func.func @transform_2(%arg0: i32, %arg1: i32, %arg2: i32) -> (i32, i32, i32, i32) {
    %c0_i32 = arith.constant 0 : i32
    %c0_i32_0 = arith.constant 0 : i32
    %c0_i32_1 = arith.constant 0 : i32
    return %arg0, %arg1, %c0_i32, %c0_i32_0 : i32, i32, i32, i32
  }
  func.func @transform_3(%arg0: i32, %arg1: i32, %arg2: i32) -> (i32, i32, i32) {
    %c0_i32 = arith.constant 0 : i32
    %c0_i32_0 = arith.constant 0 : i32
    %c0_i32_1 = arith.constant 0 : i32
    return %arg0, %c0_i32, %c0_i32_0 : i32, i32, i32
  }
  func.func @transform_4(%arg0: i32, %arg1: i32, %arg2: i32) -> (i32, i32, i32, i32) {
    %c0_i32 = arith.constant 0 : i32
    %c0_i32_0 = arith.constant 0 : i32
    return %arg0, %arg1, %arg2, %c0_i32 : i32, i32, i32, i32
  }
}

module attributes {stable_mosaic.version = 11 : i64} {
  func.func @_mm_kernel(%arg0: i32, %arg1: i32, %arg2: i32, %arg3: memref<16x32xbf16, #tpu.memory_space<vmem>>, %arg4: memref<32x32xbf16, #tpu.memory_space<vmem>>, %arg5: memref<1x32xf32, #tpu.memory_space<vmem>>, %arg6: memref<16x32xbf16, #tpu.memory_space<vmem>>, %arg7: memref<1x32xf32, #tpu.memory_space<vmem>>, %arg8: memref<1x32xf32, #tpu.memory_space<vmem>>, %arg9: memref<16x32xbf16, #tpu.memory_space<vmem>>) attributes {dimension_semantics = [#tpu.dimension_semantics<parallel>, #tpu.dimension_semantics<parallel>, #tpu.dimension_semantics<arbitrary>], iteration_bounds = array<i64: 1, 1, 1>, scalar_prefetch = 0 : i64, scratch_operands = 0 : i64, tpu.core_type = #tpu.core_type<tc>, window_params = [{transform_indices = @transform_0, window_bounds = array<i64: 16, 32>}, {transform_indices = @transform_1, window_bounds = array<i64: 32, 32>}, {transform_indices = @transform_2, window_bounds = array<i64: 1, 32>}, {transform_indices = @transform_3, window_bounds = array<i64: 16, 32>}, {transform_indices = @transform_4, window_bounds = array<i64: 1, 32>}, {transform_indices = @transform_5, window_bounds = array<i64: 1, 32>}, {transform_indices = @transform_6, window_bounds = array<i64: 16, 32>}]} {
    %c0 = arith.constant 0 : index
    %c0_0 = arith.constant 0 : index
    %0 = vector.load %arg3[%c0, %c0_0] : memref<16x32xbf16, #tpu.memory_space<vmem>>, vector<16x32xbf16>
    %c0_1 = arith.constant 0 : index
    %c0_2 = arith.constant 0 : index
    %1 = vector.load %arg4[%c0_1, %c0_2] : memref<32x32xbf16, #tpu.memory_space<vmem>>, vector<32x32xbf16>
    %cst = arith.constant dense<0.000000e+00> : vector<16x32xf32>
    %2 = tpu.matmul %0, %1, %cst {dimension_numbers = #tpu.dot_dimension_numbers<[1], [0], [0], [1], [0, 0, 1, 1], [], []>} : vector<16x32xbf16>, vector<32x32xbf16>, vector<16x32xf32> -> vector<16x32xf32>
    %c0_3 = arith.constant 0 : index
    %c0_4 = arith.constant 0 : index
    %3 = vector.load %arg5[%c0_3, %c0_4] : memref<1x32xf32, #tpu.memory_space<vmem>>, vector<1x32xf32>
    %4 = vector.broadcast %3 : vector<1x32xf32> to vector<16x32xf32>
    %5 = arith.addf %2, %4 : vector<16x32xf32>
    %c0_5 = arith.constant 0 : index
    %c0_6 = arith.constant 0 : index
    %6 = vector.load %arg6[%c0_5, %c0_6] : memref<16x32xbf16, #tpu.memory_space<vmem>>, vector<16x32xbf16>
    %7 = arith.extf %6 : vector<16x32xbf16> to vector<16x32xf32>
    %8 = arith.addf %5, %7 : vector<16x32xf32>
    %cst_7 = arith.constant dense<0.000000e+00> : vector<16xf32>
    %9 = vector.multi_reduction <add>, %8, %cst_7 [1] : vector<16x32xf32> to vector<16xf32>
    %10 = vector.shape_cast %9 : vector<16xf32> to vector<16x1xf32>
    %cst_8 = arith.constant 3.200000e+01 : f32
    %11 = vector.broadcast %cst_8 : f32 to vector<16x1xf32>
    %12 = arith.divf %10, %11 : vector<16x1xf32>
    %13 = vector.broadcast %12 : vector<16x1xf32> to vector<16x32xf32>
    %14 = arith.subf %8, %13 : vector<16x32xf32>
    %15 = arith.mulf %14, %14 : vector<16x32xf32>
    %cst_9 = arith.constant dense<0.000000e+00> : vector<16xf32>
    %16 = vector.multi_reduction <add>, %15, %cst_9 [1] : vector<16x32xf32> to vector<16xf32>
    %17 = vector.shape_cast %16 : vector<16xf32> to vector<16x1xf32>
    %cst_10 = arith.constant 3.200000e+01 : f32
    %18 = vector.broadcast %cst_10 : f32 to vector<16x1xf32>
    %19 = arith.divf %17, %18 : vector<16x1xf32>
    %cst_11 = arith.constant 9.99999974E-6 : f32
    %20 = vector.broadcast %cst_11 : f32 to vector<16x1xf32>
    %21 = arith.addf %19, %20 : vector<16x1xf32>
    %22 = math.rsqrt %21 : vector<16x1xf32>
    %23 = vector.broadcast %22 : vector<16x1xf32> to vector<16x32xf32>
    %24 = arith.mulf %14, %23 : vector<16x32xf32>
    %c0_12 = arith.constant 0 : index
    %c0_13 = arith.constant 0 : index
    %25 = vector.load %arg7[%c0_12, %c0_13] : memref<1x32xf32, #tpu.memory_space<vmem>>, vector<1x32xf32>
    %26 = vector.broadcast %25 : vector<1x32xf32> to vector<16x32xf32>
    %27 = arith.mulf %24, %26 : vector<16x32xf32>
    %c0_14 = arith.constant 0 : index
    %c0_15 = arith.constant 0 : index
    %28 = vector.load %arg8[%c0_14, %c0_15] : memref<1x32xf32, #tpu.memory_space<vmem>>, vector<1x32xf32>
    %29 = vector.broadcast %28 : vector<1x32xf32> to vector<16x32xf32>
    %30 = arith.addf %27, %29 : vector<16x32xf32>
    %31 = arith.truncf %30 : vector<16x32xf32> to vector<16x32xbf16>
    %c0_16 = arith.constant 0 : index
    %c0_17 = arith.constant 0 : index
    %32 = vector.load %arg9[%c0_16, %c0_17] : memref<16x32xbf16, #tpu.memory_space<vmem>>, vector<16x32xbf16>
    tpu.vector_store %arg9[%c0_16, %c0_17], %31 {strides = array<i32>} : memref<16x32xbf16, #tpu.memory_space<vmem>>, vector<16x32xbf16>,
    return
  }
  func.func @transform_0(%arg0: i32, %arg1: i32, %arg2: i32) -> (i32, i32) {
    %c0_i32 = arith.constant 0 : i32
    return %arg0, %arg2 : i32, i32
  }
  func.func @transform_1(%arg0: i32, %arg1: i32, %arg2: i32) -> (i32, i32) {
    %c0_i32 = arith.constant 0 : i32
    return %arg2, %arg1 : i32, i32
  }
  func.func @transform_2(%arg0: i32, %arg1: i32, %arg2: i32) -> (i32, i32) {
    %c0_i32 = arith.constant 0 : i32
    %c0_i32_0 = arith.constant 0 : i32
    return %c0_i32, %arg1 : i32, i32
  }
  func.func @transform_3(%arg0: i32, %arg1: i32, %arg2: i32) -> (i32, i32) {
    %c0_i32 = arith.constant 0 : i32
    return %arg0, %arg1 : i32, i32
  }
  func.func @transform_4(%arg0: i32, %arg1: i32, %arg2: i32) -> (i32, i32) {
    %c0_i32 = arith.constant 0 : i32
    %c0_i32_0 = arith.constant 0 : i32
    return %c0_i32, %arg1 : i32, i32
  }
  func.func @transform_5(%arg0: i32, %arg1: i32, %arg2: i32) -> (i32, i32) {
    %c0_i32 = arith.constant 0 : i32
    %c0_i32_0 = arith.constant 0 : i32
    return %c0_i32, %arg1 : i32, i32
  }
  func.func @transform_6(%arg0: i32, %arg1: i32, %arg2: i32) -> (i32, i32) {
    %c0_i32 = arith.constant 0 : i32
    return %arg0, %arg1 : i32, i32
  }
}

module attributes {stable_mosaic.version = 11 : i64} {
  func.func @_mm_kernel(%arg0: i32, %arg1: i32, %arg2: i32, %arg3: memref<16x32xbf16, #tpu.memory_space<vmem>>, %arg4: memref<32x64xbf16, #tpu.memory_space<vmem>>, %arg5: memref<1x64xf32, #tpu.memory_space<vmem>>, %arg6: memref<16x64xbf16, #tpu.memory_space<vmem>>) attributes {dimension_semantics = [#tpu.dimension_semantics<parallel>, #tpu.dimension_semantics<parallel>, #tpu.dimension_semantics<arbitrary>], iteration_bounds = array<i64: 1, 1, 1>, scalar_prefetch = 0 : i64, scratch_operands = 0 : i64, tpu.core_type = #tpu.core_type<tc>, window_params = [{transform_indices = @transform_0, window_bounds = array<i64: 16, 32>}, {transform_indices = @transform_1, window_bounds = array<i64: 32, 64>}, {transform_indices = @transform_2, window_bounds = array<i64: 1, 64>}, {transform_indices = @transform_3, window_bounds = array<i64: 16, 64>}]} {
    %c0 = arith.constant 0 : index
    %c0_0 = arith.constant 0 : index
    %0 = vector.load %arg3[%c0, %c0_0] : memref<16x32xbf16, #tpu.memory_space<vmem>>, vector<16x32xbf16>
    %c0_1 = arith.constant 0 : index
    %c0_2 = arith.constant 0 : index
    %1 = vector.load %arg4[%c0_1, %c0_2] : memref<32x64xbf16, #tpu.memory_space<vmem>>, vector<32x64xbf16>
    %cst = arith.constant dense<0.000000e+00> : vector<16x64xf32>
    %2 = tpu.matmul %0, %1, %cst {dimension_numbers = #tpu.dot_dimension_numbers<[1], [0], [0], [1], [0, 0, 1, 1], [], []>} : vector<16x32xbf16>, vector<32x64xbf16>, vector<16x64xf32> -> vector<16x64xf32>
    %c0_3 = arith.constant 0 : index
    %c0_4 = arith.constant 0 : index
    %3 = vector.load %arg5[%c0_3, %c0_4] : memref<1x64xf32, #tpu.memory_space<vmem>>, vector<1x64xf32>
    %4 = vector.broadcast %3 : vector<1x64xf32> to vector<16x64xf32>
    %5 = arith.addf %2, %4 : vector<16x64xf32>
    %6 = arith.mulf %5, %5 : vector<16x64xf32>
    %7 = arith.mulf %5, %6 : vector<16x64xf32>
    %cst_5 = arith.constant 4.471500e-02 : f32
    %8 = vector.broadcast %cst_5 : f32 to vector<16x64xf32>
    %9 = arith.mulf %8, %7 : vector<16x64xf32>
    %10 = arith.addf %5, %9 : vector<16x64xf32>
    %cst_6 = arith.constant 0.797884583 : f32
    %11 = vector.broadcast %cst_6 : f32 to vector<16x64xf32>
    %12 = arith.mulf %11, %10 : vector<16x64xf32>
    %13 = math.tanh %12 : vector<16x64xf32>
    %cst_7 = arith.constant 1.000000e+00 : f32
    %14 = vector.broadcast %cst_7 : f32 to vector<16x64xf32>
    %15 = arith.addf %14, %13 : vector<16x64xf32>
    %cst_8 = arith.constant 5.000000e-01 : f32
    %16 = vector.broadcast %cst_8 : f32 to vector<16x64xf32>
    %17 = arith.mulf %16, %15 : vector<16x64xf32>
    %18 = arith.mulf %5, %17 : vector<16x64xf32>
    %19 = arith.truncf %18 : vector<16x64xf32> to vector<16x64xbf16>
    %c0_9 = arith.constant 0 : index
    %c0_10 = arith.constant 0 : index
    %20 = vector.load %arg6[%c0_9, %c0_10] : memref<16x64xbf16, #tpu.memory_space<vmem>>, vector<16x64xbf16>
    tpu.vector_store %arg6[%c0_9, %c0_10], %19 {strides = array<i32>} : memref<16x64xbf16, #tpu.memory_space<vmem>>, vector<16x64xbf16>,
    return
  }
  func.func @transform_0(%arg0: i32, %arg1: i32, %arg2: i32) -> (i32, i32) {
    %c0_i32 = arith.constant 0 : i32
    return %arg0, %arg2 : i32, i32
  }
  func.func @transform_1(%arg0: i32, %arg1: i32, %arg2: i32) -> (i32, i32) {
    %c0_i32 = arith.constant 0 : i32
    return %arg2, %arg1 : i32, i32
  }
  func.func @transform_2(%arg0: i32, %arg1: i32, %arg2: i32) -> (i32, i32) {
    %c0_i32 = arith.constant 0 : i32
    %c0_i32_0 = arith.constant 0 : i32
    return %c0_i32, %arg1 : i32, i32
  }
  func.func @transform_3(%arg0: i32, %arg1: i32, %arg2: i32) -> (i32, i32) {
    %c0_i32 = arith.constant 0 : i32
    return %arg0, %arg1 : i32, i32
  }
}

module attributes {stable_mosaic.version = 11 : i64} {
  func.func @_mm_kernel(%arg0: i32, %arg1: i32, %arg2: i32, %arg3: memref<16x64xbf16, #tpu.memory_space<vmem>>, %arg4: memref<64x32xbf16, #tpu.memory_space<vmem>>, %arg5: memref<1x32xf32, #tpu.memory_space<vmem>>, %arg6: memref<16x32xbf16, #tpu.memory_space<vmem>>, %arg7: memref<1x32xf32, #tpu.memory_space<vmem>>, %arg8: memref<1x32xf32, #tpu.memory_space<vmem>>, %arg9: memref<16x32xbf16, #tpu.memory_space<vmem>>) attributes {dimension_semantics = [#tpu.dimension_semantics<parallel>, #tpu.dimension_semantics<parallel>, #tpu.dimension_semantics<arbitrary>], iteration_bounds = array<i64: 1, 1, 1>, scalar_prefetch = 0 : i64, scratch_operands = 0 : i64, tpu.core_type = #tpu.core_type<tc>, window_params = [{transform_indices = @transform_0, window_bounds = array<i64: 16, 64>}, {transform_indices = @transform_1, window_bounds = array<i64: 64, 32>}, {transform_indices = @transform_2, window_bounds = array<i64: 1, 32>}, {transform_indices = @transform_3, window_bounds = array<i64: 16, 32>}, {transform_indices = @transform_4, window_bounds = array<i64: 1, 32>}, {transform_indices = @transform_5, window_bounds = array<i64: 1, 32>}, {transform_indices = @transform_6, window_bounds = array<i64: 16, 32>}]} {
    %c0 = arith.constant 0 : index
    %c0_0 = arith.constant 0 : index
    %0 = vector.load %arg3[%c0, %c0_0] : memref<16x64xbf16, #tpu.memory_space<vmem>>, vector<16x64xbf16>
    %c0_1 = arith.constant 0 : index
    %c0_2 = arith.constant 0 : index
    %1 = vector.load %arg4[%c0_1, %c0_2] : memref<64x32xbf16, #tpu.memory_space<vmem>>, vector<64x32xbf16>
    %cst = arith.constant dense<0.000000e+00> : vector<16x32xf32>
    %2 = tpu.matmul %0, %1, %cst {dimension_numbers = #tpu.dot_dimension_numbers<[1], [0], [0], [1], [0, 0, 1, 1], [], []>} : vector<16x64xbf16>, vector<64x32xbf16>, vector<16x32xf32> -> vector<16x32xf32>
    %c0_3 = arith.constant 0 : index
    %c0_4 = arith.constant 0 : index
    %3 = vector.load %arg5[%c0_3, %c0_4] : memref<1x32xf32, #tpu.memory_space<vmem>>, vector<1x32xf32>
    %4 = vector.broadcast %3 : vector<1x32xf32> to vector<16x32xf32>
    %5 = arith.addf %2, %4 : vector<16x32xf32>
    %c0_5 = arith.constant 0 : index
    %c0_6 = arith.constant 0 : index
    %6 = vector.load %arg6[%c0_5, %c0_6] : memref<16x32xbf16, #tpu.memory_space<vmem>>, vector<16x32xbf16>
    %7 = arith.extf %6 : vector<16x32xbf16> to vector<16x32xf32>
    %8 = arith.addf %5, %7 : vector<16x32xf32>
    %cst_7 = arith.constant dense<0.000000e+00> : vector<16xf32>
    %9 = vector.multi_reduction <add>, %8, %cst_7 [1] : vector<16x32xf32> to vector<16xf32>
    %10 = vector.shape_cast %9 : vector<16xf32> to vector<16x1xf32>
    %cst_8 = arith.constant 3.200000e+01 : f32
    %11 = vector.broadcast %cst_8 : f32 to vector<16x1xf32>
    %12 = arith.divf %10, %11 : vector<16x1xf32>
    %13 = vector.broadcast %12 : vector<16x1xf32> to vector<16x32xf32>
    %14 = arith.subf %8, %13 : vector<16x32xf32>
    %15 = arith.mulf %14, %14 : vector<16x32xf32>
    %cst_9 = arith.constant dense<0.000000e+00> : vector<16xf32>
    %16 = vector.multi_reduction <add>, %15, %cst_9 [1] : vector<16x32xf32> to vector<16xf32>
    %17 = vector.shape_cast %16 : vector<16xf32> to vector<16x1xf32>
    %cst_10 = arith.constant 3.200000e+01 : f32
    %18 = vector.broadcast %cst_10 : f32 to vector<16x1xf32>
    %19 = arith.divf %17, %18 : vector<16x1xf32>
    %cst_11 = arith.constant 9.99999974E-6 : f32
    %20 = vector.broadcast %cst_11 : f32 to vector<16x1xf32>
    %21 = arith.addf %19, %20 : vector<16x1xf32>
    %22 = math.rsqrt %21 : vector<16x1xf32>
    %23 = vector.broadcast %22 : vector<16x1xf32> to vector<16x32xf32>
    %24 = arith.mulf %14, %23 : vector<16x32xf32>
    %c0_12 = arith.constant 0 : index
    %c0_13 = arith.constant 0 : index
    %25 = vector.load %arg7[%c0_12, %c0_13] : memref<1x32xf32, #tpu.memory_space<vmem>>, vector<1x32xf32>
    %26 = vector.broadcast %25 : vector<1x32xf32> to vector<16x32xf32>
    %27 = arith.mulf %24, %26 : vector<16x32xf32>
    %c0_14 = arith.constant 0 : index
    %c0_15 = arith.constant 0 : index
    %28 = vector.load %arg8[%c0_14, %c0_15] : memref<1x32xf32, #tpu.memory_space<vmem>>, vector<1x32xf32>
    %29 = vector.broadcast %28 : vector<1x32xf32> to vector<16x32xf32>
    %30 = arith.addf %27, %29 : vector<16x32xf32>
    %31 = arith.truncf %30 : vector<16x32xf32> to vector<16x32xbf16>
    %c0_16 = arith.constant 0 : index
    %c0_17 = arith.constant 0 : index
    %32 = vector.load %arg9[%c0_16, %c0_17] : memref<16x32xbf16, #tpu.memory_space<vmem>>, vector<16x32xbf16>
    tpu.vector_store %arg9[%c0_16, %c0_17], %31 {strides = array<i32>} : memref<16x32xbf16, #tpu.memory_space<vmem>>, vector<16x32xbf16>,
    return
  }
  func.func @transform_0(%arg0: i32, %arg1: i32, %arg2: i32) -> (i32, i32) {
    %c0_i32 = arith.constant 0 : i32
    return %arg0, %arg2 : i32, i32
  }
  func.func @transform_1(%arg0: i32, %arg1: i32, %arg2: i32) -> (i32, i32) {
    %c0_i32 = arith.constant 0 : i32
    return %arg2, %arg1 : i32, i32
  }
  func.func @transform_2(%arg0: i32, %arg1: i32, %arg2: i32) -> (i32, i32) {
    %c0_i32 = arith.constant 0 : i32
    %c0_i32_0 = arith.constant 0 : i32
    return %c0_i32, %arg1 : i32, i32
  }
  func.func @transform_3(%arg0: i32, %arg1: i32, %arg2: i32) -> (i32, i32) {
    %c0_i32 = arith.constant 0 : i32
    return %arg0, %arg1 : i32, i32
  }
  func.func @transform_4(%arg0: i32, %arg1: i32, %arg2: i32) -> (i32, i32) {
    %c0_i32 = arith.constant 0 : i32
    %c0_i32_0 = arith.constant 0 : i32
    return %c0_i32, %arg1 : i32, i32
  }
  func.func @transform_5(%arg0: i32, %arg1: i32, %arg2: i32) -> (i32, i32) {
    %c0_i32 = arith.constant 0 : i32
    %c0_i32_0 = arith.constant 0 : i32
    return %c0_i32, %arg1 : i32, i32
  }
  func.func @transform_6(%arg0: i32, %arg1: i32, %arg2: i32) -> (i32, i32) {
    %c0_i32 = arith.constant 0 : i32
    return %arg0, %arg1 : i32, i32
  }
}

module attributes {stable_mosaic.version = 11 : i64} {
  func.func @_mm_kernel(%arg0: i32, %arg1: i32, %arg2: i32, %arg3: memref<16x32xbf16, #tpu.memory_space<vmem>>, %arg4: memref<32x64xbf16, #tpu.memory_space<vmem>>, %arg5: memref<1x64xf32, #tpu.memory_space<vmem>>, %arg6: memref<16x64xf32, #tpu.memory_space<vmem>>) attributes {dimension_semantics = [#tpu.dimension_semantics<parallel>, #tpu.dimension_semantics<parallel>, #tpu.dimension_semantics<arbitrary>], iteration_bounds = array<i64: 1, 1, 1>, scalar_prefetch = 0 : i64, scratch_operands = 0 : i64, tpu.core_type = #tpu.core_type<tc>, window_params = [{transform_indices = @transform_0, window_bounds = array<i64: 16, 32>}, {transform_indices = @transform_1, window_bounds = array<i64: 32, 64>}, {transform_indices = @transform_2, window_bounds = array<i64: 1, 64>}, {transform_indices = @transform_3, window_bounds = array<i64: 16, 64>}]} {
    %c0 = arith.constant 0 : index
    %c0_0 = arith.constant 0 : index
    %0 = vector.load %arg3[%c0, %c0_0] : memref<16x32xbf16, #tpu.memory_space<vmem>>, vector<16x32xbf16>
    %c0_1 = arith.constant 0 : index
    %c0_2 = arith.constant 0 : index
    %1 = vector.load %arg4[%c0_1, %c0_2] : memref<32x64xbf16, #tpu.memory_space<vmem>>, vector<32x64xbf16>
    %cst = arith.constant dense<0.000000e+00> : vector<16x64xf32>
    %2 = tpu.matmul %0, %1, %cst {dimension_numbers = #tpu.dot_dimension_numbers<[1], [0], [0], [1], [0, 0, 1, 1], [], []>} : vector<16x32xbf16>, vector<32x64xbf16>, vector<16x64xf32> -> vector<16x64xf32>
    %c0_3 = arith.constant 0 : index
    %c0_4 = arith.constant 0 : index
    %3 = vector.load %arg5[%c0_3, %c0_4] : memref<1x64xf32, #tpu.memory_space<vmem>>, vector<1x64xf32>
    %4 = vector.broadcast %3 : vector<1x64xf32> to vector<16x64xf32>
    %5 = arith.addf %2, %4 : vector<16x64xf32>
    %c0_5 = arith.constant 0 : index
    %c0_6 = arith.constant 0 : index
    %6 = vector.load %arg6[%c0_5, %c0_6] : memref<16x64xf32, #tpu.memory_space<vmem>>, vector<16x64xf32>
    tpu.vector_store %arg6[%c0_5, %c0_6], %5 {strides = array<i32>} : memref<16x64xf32, #tpu.memory_space<vmem>>, vector<16x64xf32>,
    return
  }
  func.func @transform_0(%arg0: i32, %arg1: i32, %arg2: i32) -> (i32, i32) {
    %c0_i32 = arith.constant 0 : i32
    return %arg0, %arg2 : i32, i32
  }
  func.func @transform_1(%arg0: i32, %arg1: i32, %arg2: i32) -> (i32, i32) {
    %c0_i32 = arith.constant 0 : i32
    return %arg2, %arg1 : i32, i32
  }
  func.func @transform_2(%arg0: i32, %arg1: i32, %arg2: i32) -> (i32, i32) {
    %c0_i32 = arith.constant 0 : i32
    %c0_i32_0 = arith.constant 0 : i32
    return %c0_i32, %arg1 : i32, i32
  }
  func.func @transform_3(%arg0: i32, %arg1: i32, %arg2: i32) -> (i32, i32) {
    %c0_i32 = arith.constant 0 : i32
    return %arg0, %arg1 : i32, i32
  }
}

module attributes {stable_mosaic.version = 11 : i64} {
  func.func @_mm_kernel(%arg0: i32, %arg1: i32, %arg2: i32, %arg3: memref<16x32xbf16, #tpu.memory_space<vmem>>, %arg4: memref<32x32xbf16, #tpu.memory_space<vmem>>, %arg5: memref<1x32xf32, #tpu.memory_space<vmem>>, %arg6: memref<1x32xf32, #tpu.memory_space<vmem>>, %arg7: memref<1x32xf32, #tpu.memory_space<vmem>>, %arg8: memref<16x32xbf16, #tpu.memory_space<vmem>>) attributes {dimension_semantics = [#tpu.dimension_semantics<parallel>, #tpu.dimension_semantics<parallel>, #tpu.dimension_semantics<arbitrary>], iteration_bounds = array<i64: 1, 1, 1>, scalar_prefetch = 0 : i64, scratch_operands = 0 : i64, tpu.core_type = #tpu.core_type<tc>, window_params = [{transform_indices = @transform_0, window_bounds = array<i64: 16, 32>}, {transform_indices = @transform_1, window_bounds = array<i64: 32, 32>}, {transform_indices = @transform_2, window_bounds = array<i64: 1, 32>}, {transform_indices = @transform_3, window_bounds = array<i64: 1, 32>}, {transform_indices = @transform_4, window_bounds = array<i64: 1, 32>}, {transform_indices = @transform_5, window_bounds = array<i64: 16, 32>}]} {
    %c0 = arith.constant 0 : index
    %c0_0 = arith.constant 0 : index
    %0 = vector.load %arg3[%c0, %c0_0] : memref<16x32xbf16, #tpu.memory_space<vmem>>, vector<16x32xbf16>
    %1 = arith.cmpf one, %0, %0 : vector<16x32xbf16>
    %cst = arith.constant 0.000000e+00 : bf16
    %2 = vector.broadcast %cst : bf16 to vector<16x32xbf16>
    %3 = arith.select %1, %2, %0 : vector<16x32xi1>, vector<16x32xbf16>
    %c0_1 = arith.constant 0 : index
    %c0_2 = arith.constant 0 : index
    %4 = vector.load %arg4[%c0_1, %c0_2] : memref<32x32xbf16, #tpu.memory_space<vmem>>, vector<32x32xbf16>
    %cst_3 = arith.constant dense<0.000000e+00> : vector<16x32xf32>
    %5 = tpu.matmul %3, %4, %cst_3 {dimension_numbers = #tpu.dot_dimension_numbers<[1], [0], [0], [1], [0, 0, 1, 1], [], []>} : vector<16x32xbf16>, vector<32x32xbf16>, vector<16x32xf32> -> vector<16x32xf32>
    %c0_4 = arith.constant 0 : index
    %c0_5 = arith.constant 0 : index
    %6 = vector.load %arg5[%c0_4, %c0_5] : memref<1x32xf32, #tpu.memory_space<vmem>>, vector<1x32xf32>
    %7 = vector.broadcast %6 : vector<1x32xf32> to vector<16x32xf32>
    %8 = arith.addf %5, %7 : vector<16x32xf32>
    %9 = arith.mulf %8, %8 : vector<16x32xf32>
    %10 = arith.mulf %8, %9 : vector<16x32xf32>
    %cst_6 = arith.constant 4.471500e-02 : f32
    %11 = vector.broadcast %cst_6 : f32 to vector<16x32xf32>
    %12 = arith.mulf %11, %10 : vector<16x32xf32>
    %13 = arith.addf %8, %12 : vector<16x32xf32>
    %cst_7 = arith.constant 0.797884583 : f32
    %14 = vector.broadcast %cst_7 : f32 to vector<16x32xf32>
    %15 = arith.mulf %14, %13 : vector<16x32xf32>
    %16 = math.tanh %15 : vector<16x32xf32>
    %cst_8 = arith.constant 1.000000e+00 : f32
    %17 = vector.broadcast %cst_8 : f32 to vector<16x32xf32>
    %18 = arith.addf %17, %16 : vector<16x32xf32>
    %cst_9 = arith.constant 5.000000e-01 : f32
    %19 = vector.broadcast %cst_9 : f32 to vector<16x32xf32>
    %20 = arith.mulf %19, %18 : vector<16x32xf32>
    %21 = arith.mulf %8, %20 : vector<16x32xf32>
    %cst_10 = arith.constant dense<0.000000e+00> : vector<16xf32>
    %22 = vector.multi_reduction <add>, %21, %cst_10 [1] : vector<16x32xf32> to vector<16xf32>
    %23 = vector.shape_cast %22 : vector<16xf32> to vector<16x1xf32>
    %cst_11 = arith.constant 3.200000e+01 : f32
    %24 = vector.broadcast %cst_11 : f32 to vector<16x1xf32>
    %25 = arith.divf %23, %24 : vector<16x1xf32>
    %26 = vector.broadcast %25 : vector<16x1xf32> to vector<16x32xf32>
    %27 = arith.subf %21, %26 : vector<16x32xf32>
    %28 = arith.mulf %27, %27 : vector<16x32xf32>
    %cst_12 = arith.constant dense<0.000000e+00> : vector<16xf32>
    %29 = vector.multi_reduction <add>, %28, %cst_12 [1] : vector<16x32xf32> to vector<16xf32>
    %30 = vector.shape_cast %29 : vector<16xf32> to vector<16x1xf32>
    %cst_13 = arith.constant 3.200000e+01 : f32
    %31 = vector.broadcast %cst_13 : f32 to vector<16x1xf32>
    %32 = arith.divf %30, %31 : vector<16x1xf32>
    %cst_14 = arith.constant 9.99999974E-6 : f32
    %33 = vector.broadcast %cst_14 : f32 to vector<16x1xf32>
    %34 = arith.addf %32, %33 : vector<16x1xf32>
    %35 = math.rsqrt %34 : vector<16x1xf32>
    %36 = vector.broadcast %35 : vector<16x1xf32> to vector<16x32xf32>
    %37 = arith.mulf %27, %36 : vector<16x32xf32>
    %c0_15 = arith.constant 0 : index
    %c0_16 = arith.constant 0 : index
    %38 = vector.load %arg6[%c0_15, %c0_16] : memref<1x32xf32, #tpu.memory_space<vmem>>, vector<1x32xf32>
    %39 = vector.broadcast %38 : vector<1x32xf32> to vector<16x32xf32>
    %40 = arith.mulf %37, %39 : vector<16x32xf32>
    %c0_17 = arith.constant 0 : index
    %c0_18 = arith.constant 0 : index
    %41 = vector.load %arg7[%c0_17, %c0_18] : memref<1x32xf32, #tpu.memory_space<vmem>>, vector<1x32xf32>
    %42 = vector.broadcast %41 : vector<1x32xf32> to vector<16x32xf32>
    %43 = arith.addf %40, %42 : vector<16x32xf32>
    %44 = arith.truncf %43 : vector<16x32xf32> to vector<16x32xbf16>
    %c0_19 = arith.constant 0 : index
    %c0_20 = arith.constant 0 : index
    %45 = vector.load %arg8[%c0_19, %c0_20] : memref<16x32xbf16, #tpu.memory_space<vmem>>, vector<16x32xbf16>
    tpu.vector_store %arg8[%c0_19, %c0_20], %44 {strides = array<i32>} : memref<16x32xbf16, #tpu.memory_space<vmem>>, vector<16x32xbf16>,
    return
  }
  func.func @transform_0(%arg0: i32, %arg1: i32, %arg2: i32) -> (i32, i32) {
    %c0_i32 = arith.constant 0 : i32
    return %arg0, %arg2 : i32, i32
  }
  func.func @transform_1(%arg0: i32, %arg1: i32, %arg2: i32) -> (i32, i32) {
    %c0_i32 = arith.constant 0 : i32
    return %arg2, %arg1 : i32, i32
  }
  func.func @transform_2(%arg0: i32, %arg1: i32, %arg2: i32) -> (i32, i32) {
    %c0_i32 = arith.constant 0 : i32
    %c0_i32_0 = arith.constant 0 : i32
    return %c0_i32, %arg1 : i32, i32
  }
  func.func @transform_3(%arg0: i32, %arg1: i32, %arg2: i32) -> (i32, i32) {
    %c0_i32 = arith.constant 0 : i32
    %c0_i32_0 = arith.constant 0 : i32
    return %c0_i32, %arg1 : i32, i32
  }
  func.func @transform_4(%arg0: i32, %arg1: i32, %arg2: i32) -> (i32, i32) {
    %c0_i32 = arith.constant 0 : i32
    %c0_i32_0 = arith.constant 0 : i32
    return %c0_i32, %arg1 : i32, i32
  }
  func.func @transform_5(%arg0: i32, %arg1: i32, %arg2: i32) -> (i32, i32) {
    %c0_i32 = arith.constant 0 : i32
    return %arg0, %arg1 : i32, i32
  }
}

</mosaic_0001>

<bundles_post_ra>
// kernel: _lambda_.13
= control target key start
LH: loop header
LB: loop body
LE: loop exit
PB: predicated region body
PF: predicated region fallthrough
CT: control target
= control target key end

     0   :  { %s352_s15 = smov 0   ;;  %s387_s0 = inlined_call_operand.vmem [shape: bf16[2,8,32], index: 0, kind: input, shape index: {}]   ;;  %s388_s1 = inlined_call_operand.vmem [shape: bf16[8,32], index: 1, kind: input, shape index: {}]   ;;  %s389_s2 = inlined_call_operand.vmem [shape: f32[1,32], index: 2, kind: input, shape index: {}]   ;;  %s390_s3 = inlined_call_operand.vmem [shape: f32[1,32], index: 3, kind: input, shape index: {}]   ;;  %s391_s4 = inlined_call_operand.vmem [shape: bf16[2,8,32], index: 4, kind: output, shape index: {}]  }
   0x1 LB: > { %s294_s16 = sadd.s32 4294967295, %s324_s15   ;;  %p298_p0 = scmp.ge.s32.totalorder %s324_s15, 1  ;;  %s324_s15 = sphi %s352_s15, %s14_s15  }
   0x2   : > { %p161_p1 = scmp.lt.s32.totalorder %s324_s15, 3 }
   0x4   : > { %p162_p2 = pnand %p298_p0, %p161_p1 }
   0x5   : > { %p185_p3 = scmp.lt.s32.totalorder (!%p162_p2), %s294_s16, 1 }
   0x6   : > { %165 = sbr.rel (%p162_p2) target bundleno = 290 (0x122), region = 36 }
   0xb   : > { %s393_s16 = smov (!%p185_p3, %s294_s16), 1  ;;  %v195_v0 = vld [vmem:[%s388_s1] sm:$0xf]  ;;  %vm198_vm0 = vcmask 261120   ;;  %v326_v6 = vmov 32.0   ;;  %vm239_vm5 = vcmask 257024  }
   0xc   : > { %s299_s19 = sshll.u32 %s393_s16, 2  ;;  %v196_v1 = vunpack.c.l.bf16 %v195_v0  ;;  %314 = vrcp.f32 %v326_v6  ;;  %v312_v27 = vld [vmem:[%s389_s2] ss:$0 sm:$0xff] }
   0xd   : > { %s188_s22 = scalar_lea.vmem %s387_s0, %s299_s19  ;;  %v313_v29 = vld [vmem:[%s390_s3] ss:$0 sm:$0xff]  ;;  %s192_s29 = scalar_lea.vmem %s391_s4, %s299_s19 }
   0xe   : > { %v193_v2 = vld [vmem:[%s188_s22] sm:$0xf] }
   0xf   : > { %v194_v3 = vunpack.c.l.bf16 %v193_v2 }
  0x11   : > { %v197_v4 = vadd.f32 %v196_v1, %v194_v3 }
  0x12   : > { %v315_v7 = vpop.eup %314 }
  0x13   : > { %v199_v5 = vsel %vm198_vm0, %v197_v4, 0.0  ;;  %v203_v8 = vmul.f32 32.0, %v315_v7  ;;  %vm207_vm1 = vweird.f32 %v315_v7 }
  0x14   : > { %200 = vadd.xlane.f32.xlu0 %v199_v5 }
  0x15   : > { %v204_v9 = vsub.f32 1.0, %v203_v8 }
  0x17   : > { %v205_v10 = vmul.f32 %v315_v7, %v204_v9 }
  0x19   : > { %v206_v11 = vadd.f32 %v315_v7, %v205_v10 }
  0x1b   : > { %v208_v12 = vsel %vm207_vm1, %v315_v7, %v206_v11 }
  0x87   : > { %v201_v13 = vpop.xlane.xlu0 %200 }
  0x88   : > { %v209_v14 = vmul.f32 %v208_v12, %v201_v13 }
  0x8a   : > { %v210_v15 = vsub.f32 %v197_v4, %v209_v14 }
  0x8c   : > { %v211_v16 = vmul.f32 %v210_v15, %v210_v15 }
  0x8e   : > { %v212_v17 = vsel %vm198_vm0, %v211_v16, 0.0 }
  0x8f   : > { %213 = vadd.xlane.f32.xlu0 %v212_v17 }
 0x102   : > { %v214_v18 = vpop.xlane.xlu0 %213 }
 0x103   : > { %v215_v19 = vmul.f32 %v214_v18, %v208_v12 }
 0x105   : > { %v216_v20 = vadd.f32 1e-05, %v215_v19 }
 0x107   : > { %316 = vrsqrt.f32 %v216_v20  ;;  %vm223_vm3 = vweird.f32 %v216_v20 }
 0x10d   : > { %v317_v21 = vpop.eup %316 }
 0x10e   : > { %v218_v22 = vmul.f32 %v317_v21, %v216_v20  ;;  %vm224_vm2 = vweird.f32 %v317_v21 }
 0x10f   : > { %vm225_vm4 = vmor %vm223_vm3, %vm224_vm2 }
 0x110   : > { %v219_v23 = vmul.f32 %v317_v21, %v218_v22 }
 0x112   : > { %v220_v24 = vmul.f32 0.5, %v219_v23 }
 0x114   : > { %v221_v25 = vsub.f32 1.5, %v220_v24 }
 0x116   : > { %v222_v26 = vmul.f32 %v317_v21, %v221_v25 }
 0x118   : > { %v226_v28 = vsel %vm225_vm4, %v317_v21, %v222_v26 }
 0x119   : > { %v227_v30 = vmul.f32 %v226_v28, %v210_v15 }
 0x11b   : > { %v232_v31 = vmul.f32 %v312_v27, %v227_v30 }
 0x11d   : > { %v237_v32 = vadd.f32 %v313_v29, %v232_v31 }
 0x11f   : > { %v238_v33 = vpack.c.bf16 %v237_v32, %v237_v32 }
 0x121   : > { %240 = vst.msk [vmem:[%s192_s29] sm:$0xf] %vm239_vm5, %v238_v33 }
 0x122 PF: > { %s14_s15 = sadd.s32 1, %s324_s15  }
 0x123   : > { %p11_p4 = scmp.ge.s32.totalorder %s14_s15, 4  }
 0x125   :  { %13 = sbr.rel (!%p11_p4) target bundleno = 1 (0x1), region = 66 }

// kernel: _lambda_.14
= control target key start
LH: loop header
LB: loop body
LE: loop exit
PB: predicated region body
PF: predicated region fallthrough
CT: control target
= control target key end

     0   :  { %vm42_vm0 = vcmask 261120   ;;  %vm62_vm1 = vcmask 781312   ;;  %s124_s1 = inlined_call_operand.vmem [shape: bf16[32,96], index: 1, kind: input, shape index: {}]   ;;  %s125_s2 = inlined_call_operand.vmem [shape: f32[1,96], index: 2, kind: input, shape index: {}]   ;;  %s126_s0 = inlined_call_operand.vmem [shape: bf16[16,32], index: 0, kind: input, shape index: {}]   ;;  %s127_s3 = inlined_call_operand.vmem [shape: bf16[16,96], index: 3, kind: output, shape index: {}]  }
   0x1   :  { %v84_v0 = vld [vmem:[%s124_s1 + $0x8] sm:$0xff]  ;;  %v83_v1 = vld [vmem:[%s124_s1] sm:$0xff] }
   0x2   :  { %52 = vmatpush.bf16.msra.mxu0 %v84_v0  ;;  %v82_v2 = vld [vmem:[%s126_s0] sm:$0xff] }
   0x3   :  { %v85_v3 = vld [vmem:[%s125_s2] ss:$0 sm:$0xff] }
   0x6   :  { %53 = vmatpush.bf16.msra.mxu0 %v83_v1 }
   0x9   :  { %81 = vmatmul.msk.bf16.vlgmr.msra.gmra.mxu0 %vm42_vm0, %v82_v2 }
  0x86   :  { %v55_v4 = vpop.f32.mrf.mxu0 }
  0x87   :  { %v56_v5 = vadd.f32 %v85_v3, %v55_v4 }
  0x89   :  { %v60_v6 = vpack.c.bf16 %v56_v5, %v56_v5 }
  0x8b   :  { %63 = vst.msk [vmem:[%s127_s3] sm:$0xf] %vm62_vm1, %v60_v6 }
  0x8e   :  { %v57_v7 = vpop.f32.mrf.mxu0 }
  0x8f   :  { %v58_v8 = vadd.f32 %v85_v3, %v57_v7 }
  0x91   :  { %v61_v9 = vpack.c.bf16 %v58_v8, %v58_v8 }
  0x93   :  { %64 = vst.msk [vmem:[%s127_s3 + $0x4] sm:$0xf] %vm62_vm1, %v61_v9 }

// kernel: _lambda_.15
= control target key start
LH: loop header
LB: loop body
LE: loop exit
PB: predicated region body
PF: predicated region fallthrough
CT: control target
= control target key end

     0   :  { %s669_s15 = smov 0   ;;  %s671_s16 = smov 0   ;;  %s740_s0 = inlined_call_operand.vmem [shape: bf16[2,4,8,8], index: 0, kind: input, shape index: {}]   ;;  %s741_s1 = inlined_call_operand.vmem [shape: bf16[2,4,8,8], index: 1, kind: input, shape index: {}]   ;;  %s742_s2 = inlined_call_operand.vmem [shape: bf16[2,4,8,8], index: 2, kind: input, shape index: {}]   ;;  %s743_s3 = inlined_call_operand.vmem [shape: f32[2,1,8], index: 3, kind: input, shape index: {}]   ;;  %s744_s4 = inlined_call_operand.vmem [shape: bf16[2,4,8,8], index: 4, kind: output, shape index: {}]  }
   0x1   :  { %s673_s17 = smov 0   ;;  %s675_s18 = smov 0  }
   0x2   :  { %s677_s19 = smov 0  }
   0x3 LB: > { %s29_s20 = sadd.s32 1, %s634_s17  ;;  %s33_s21 = sadd.s32 1, %s638_s18  ;;  %s642_s19 = sphi %s677_s19, %s14_s19   ;;  %s638_s18 = sphi %s675_s18, %s748_s18   ;;  %s634_s17 = sphi %s673_s17, %s747_s17   ;;  %s630_s16 = sphi %s671_s16, %s746_s16   ;;  %s626_s15 = sphi %s669_s15, %s745_s15  }
   0x4   : > { %p31_p0 = scmp.ge.s32.totalorder %s29_s20, 4  ;;  %p547_p1 = scmp.ge.s32.totalorder %s642_s19, 1 }
   0x5   : > { %p233_p2 = scmp.lt.s32.totalorder %s642_s19, 9 }
   0x6   : > { %s750_s20 = smov (%p31_p0, %s29_s20), 0  ;;  %s752_s21 = smov (!%p31_p0, %s33_s21), %s638_s18 }
   0x7   : > { %p234_p3 = pnand %p547_p1, %p233_p2  ;;  %p35_p4 = scmp.ge.s32.totalorder %s752_s21, 2 }
   0x8   : > { %p290_p5 = scmp.lt.s32.totalorder (!%p234_p3), %s630_s16, 1  ;;  %p292_p6 = scmp.lt.s32.totalorder (!%p234_p3), %s626_s15, 3 }
   0x9   : > { %s754_s21 = smov (%p35_p4, %s752_s21), 0  ;;  %237 = sbr.rel (%p234_p3) target bundleno = 546 (0x222), region = 36 }
   0xe   : > { %s756_s16 = smov (!%p290_p5, %s630_s16), 1  ;;  %s758_s15 = smov (!%p292_p6, %s626_s15), 3  ;;  %vm341_vm0 = vcmask 64512   ;;  %vm376_vm1 = vcmask 1043456   ;;  %vm394_vm2 = vcmask 60416  }
   0xf   : > { %s548_s22 = sshll.u32 %s756_s16, 2  ;;  %s319_s7 = scalar_lea.vmem %s743_s3, %s756_s16 }
  0x10   : > { %s298_s23 = sadd.s32 %s548_s22, %s758_s15  ;;  %v335_v3 = vld [vmem:[%s319_s7] sm:$0x1] }
  0x11   : > { %s699_s24 = sshll.u32 %s298_s23, 2  ;;  %v336_v4 = vsub.f32 1.0, %v335_v3 }
  0x12   : > { %s308_s27 = scalar_lea.vmem %s741_s1, %s699_s24  ;;  %s300_s30 = scalar_lea.vmem %s740_s0, %s699_s24 }
  0x13   : > { %v333_v0 = vld [vmem:[%s308_s27] sm:$0xf]  ;;  %v337_v5 = vmul.f32 -1e+09, %v336_v4  ;;  %s316_s10 = scalar_lea.vmem %s742_s2, %s699_s24  ;;  %s330_s13 = scalar_lea.vmem %s744_s4, %s699_s24 }
  0x14   : > { %v346_v1 = vsel %vm341_vm0, %v333_v0, 0  ;;  %v332_v2 = vld [vmem:[%s300_s30] sm:$0xf] }
  0x15   : > { %355 = vmatpush.bf16.xpose.msra.mxu0 %v346_v1  ;;  %v339_v6 = vperm.slane %v337_v5, 0  ;;  %v334_v16 = vld [vmem:[%s316_s10] sm:$0xf] }
  0x16   : > { %v378_v17 = vsel %vm376_vm1, %v334_v16, 0 }
  0x17   : > { %387 = vmatpush.bf16.msra.mxu1 %v378_v17 }
  0x1c   : > { %556 = vmatmul.msk.bf16.vlgmr.msra.gmra.mxu0 %vm341_vm0, %v332_v2 }
  0x99   : > { %v357_v7 = vpop.f32.mrf.mxu0 }
  0x9a   : > { %v358_v8 = vadd.f32 %v357_v7, %v339_v6 }
  0x9c   : > { %v361_v9 = vsel %vm341_vm0, %v358_v8, -inf }
  0x9d   : > { %362 = vmax.xlane.f32.xlu0 %v361_v9 }
  0xa1   : > { %v359_v10 = vpop.f32.mrf.mxu0 }
 0x110   : > { %v363_v11 = vpop.xlane.xlu0 %362 }
 0x111   : > { %v364_v12 = vsub.f32 %v358_v8, %v363_v11 }
 0x113   : > { %v365_v13 = vmul.f32 1.442695, %v364_v12 }
 0x115   : > { %600 = vpow2.f32 %v365_v13 }
 0x11b   : > { %v601_v14 = vpop.eup %600 }
 0x11c   : > { %v367_v15 = vsel %vm341_vm0, %v601_v14, 0.0 }
 0x11d   : > { %368 = vadd.xlane.f32.xlu0 %v367_v15 }
 0x190   : > { %v369_v18 = vpop.xlane.xlu0 %368 }
 0x191   : > { %602 = vrcp.f32 %v369_v18 }
 0x197   : > { %v603_v19 = vpop.eup %602 }
 0x198   : > { %v371_v20 = vmul.f32 %v603_v19, %v601_v14 }
 0x19a   : > { %v372_v21 = vpack.c.bf16 %v371_v20, %v371_v20 }
 0x19c   : > { %557 = vmatmul.msk.bf16.vlgmr.msra.gmra.mxu1 %vm341_vm0, %v372_v21 }
 0x219   : > { %v389_v22 = vpop.f32.mrf.mxu1 }
 0x21a   : > { %v393_v23 = vpack.c.bf16 %v389_v22, %v389_v22 }
 0x21c   : > { %395 = vst.msk [vmem:[%s330_s13] sm:$0xf] %vm394_vm2, %v393_v23 }
 0x221   : > { %v391_v24 = vpop.f32.mrf.mxu1 }
 0x222 PF: > { %s14_s19 = sadd.s32 1, %s642_s19   ;;  %s745_s15 = smov %s634_s17 }
 0x223   : > { %p11_p7 = scmp.ge.s32.totalorder %s14_s19, 10   ;;  %s746_s16 = smov %s638_s18 }
 0x224   : > { %s747_s17 = smov %s750_s20  ;;  %s748_s18 = smov %s754_s21 }
 0x225   :  { %13 = sbr.rel (!%p11_p7) target bundleno = 3 (0x3), region = 75 }

// kernel: _lambda_.16
= control target key start
LH: loop header
LB: loop body
LE: loop exit
PB: predicated region body
PF: predicated region fallthrough
CT: control target
= control target key end

     0   :  { %vm51_vm0 = vcmask 261120   ;;  %v177_v15 = vmov 32.0   ;;  %vm140_vm6 = vcmask 257024   ;;  %s245_s1 = inlined_call_operand.vmem [shape: bf16[32,32], index: 1, kind: input, shape index: {}]   ;;  %s246_s2 = inlined_call_operand.vmem [shape: f32[1,32], index: 2, kind: input, shape index: {}]   ;;  %s247_s0 = inlined_call_operand.vmem [shape: bf16[16,32], index: 0, kind: input, shape index: {}]   ;;  %s248_s3 = inlined_call_operand.vmem [shape: bf16[16,32], index: 3, kind: input, shape index: {}]   ;;  %s249_s4 = inlined_call_operand.vmem [shape: f32[1,32], index: 4, kind: input, shape index: {}]   ;;  %s250_s5 = inlined_call_operand.vmem [shape: f32[1,32], index: 5, kind: input, shape index: {}]   ;;  %s251_s6 = inlined_call_operand.vmem [shape: bf16[16,32], index: 6, kind: output, shape index: {}]  }
   0x1   :  { %v162_v0 = vld [vmem:[%s245_s1 + $0x8] sm:$0xff]  ;;  %v161_v1 = vld [vmem:[%s245_s1] sm:$0xff]  ;;  %171 = vrcp.f32 %v177_v15 }
   0x2   :  { %61 = vmatpush.bf16.msra.mxu0 %v162_v0  ;;  %v160_v2 = vld [vmem:[%s247_s0] sm:$0xff] }
   0x3   :  { %v164_v3 = vld [vmem:[%s248_s3] sm:$0xff]  }
   0x4   :  { %v168_v4 = vld [vmem:[%s246_s2] ss:$0 sm:$0xff]  ;;  %v165_v5 = vunpack.c.l.bf16 %v164_v3  ;;  %v166_v10 = vunpack.c.h.bf16 %v164_v3 }
   0x5   :  { %v169_v46 = vld [vmem:[%s249_s4] ss:$0 sm:$0xff] }
   0x6   :  { %62 = vmatpush.bf16.msra.mxu0 %v161_v1  ;;  %v170_v49 = vld [vmem:[%s250_s5] ss:$0 sm:$0xff] }
   0x7   :  { %v172_v16 = vpop.eup %171 }
   0x8   :  { %v82_v17 = vmul.f32 32.0, %v172_v16  ;;  %vm86_vm1 = vweird.f32 %v172_v16 }
   0x9   :  { %159 = vmatmul.msk.bf16.vlgmr.msra.gmra.mxu0 %vm51_vm0, %v160_v2 }
   0xa   :  { %v83_v18 = vsub.f32 1.0, %v82_v17 }
   0xc   :  { %v84_v19 = vmul.f32 %v172_v16, %v83_v18 }
   0xe   :  { %v85_v20 = vadd.f32 %v172_v16, %v84_v19 }
  0x10   :  { %v87_v21 = vsel %vm86_vm1, %v172_v16, %v85_v20 }
  0x86   :  { %v64_v6 = vpop.f32.mrf.mxu0 }
  0x87   :  { %v65_v7 = vadd.f32 %v168_v4, %v64_v6 }
  0x89   :  { %v73_v8 = vadd.f32 %v165_v5, %v65_v7 }
  0x8b   :  { %v75_v9 = vsel %vm51_vm0, %v73_v8, 0.0 }
  0x8c   :  { %76 = vadd.xlane.f32.xlu0 %v75_v9 }
  0x8e   :  { %v66_v11 = vpop.f32.mrf.mxu0 }
  0x8f   :  { %v67_v12 = vadd.f32 %v168_v4, %v66_v11 }
  0x91   :  { %v74_v13 = vadd.f32 %v166_v10, %v67_v12 }
  0x93   :  { %v78_v14 = vsel %vm51_vm0, %v74_v13, 0.0 }
  0x94   :  { %79 = vadd.xlane.f32.xlu0 %v78_v14 }
  0xff   :  { %v77_v22 = vpop.xlane.xlu0 %76 }
 0x100   :  { %v88_v23 = vmul.f32 %v87_v21, %v77_v22 }
 0x102   :  { %v90_v24 = vsub.f32 %v73_v8, %v88_v23 }
 0x104   :  { %v92_v25 = vmul.f32 %v90_v24, %v90_v24 }
 0x106   :  { %v94_v26 = vsel %vm51_vm0, %v92_v25, 0.0 }
 0x107   :  { %95 = vadd.xlane.f32.xlu1 %v94_v26  ;;  %v80_v27 = vpop.xlane.xlu0 %79 }
 0x108   :  { %v89_v28 = vmul.f32 %v87_v21, %v80_v27 }
 0x10a   :  { %v91_v29 = vsub.f32 %v74_v13, %v89_v28 }
 0x10c   :  { %v93_v30 = vmul.f32 %v91_v29, %v91_v29 }
 0x10e   :  { %v97_v31 = vsel %vm51_vm0, %v93_v30, 0.0 }
 0x10f   :  { %98 = vadd.xlane.f32.xlu1 %v97_v31 }
 0x17a   :  { %v96_v32 = vpop.xlane.xlu1 %95 }
 0x17b   :  { %v100_v33 = vmul.f32 %v96_v32, %v87_v21 }
 0x17d   :  { %v102_v34 = vadd.f32 1e-05, %v100_v33 }
 0x17f   :  { %173 = vrsqrt.f32 %v102_v34  ;;  %vm110_vm3 = vweird.f32 %v102_v34 }
 0x182   :  { %v99_v35 = vpop.xlane.xlu1 %98 }
 0x183   :  { %v101_v36 = vmul.f32 %v99_v35, %v87_v21 }
 0x185   :  { %v174_v37 = vpop.eup %173  ;;  %v103_v38 = vadd.f32 1e-05, %v101_v36 }
 0x186   :  { %v105_v39 = vmul.f32 %v174_v37, %v102_v34  ;;  %vm111_vm2 = vweird.f32 %v174_v37 }
 0x187   :  { %175 = vrsqrt.f32 %v103_v38  ;;  %vm112_vm4 = vmor %vm110_vm3, %vm111_vm2  ;;  %vm120_vm7 = vweird.f32 %v103_v38 }
 0x188   :  { %v106_v40 = vmul.f32 %v174_v37, %v105_v39 }
 0x18a   :  { %v107_v41 = vmul.f32 0.5, %v106_v40 }
 0x18c   :  { %v108_v42 = vsub.f32 1.5, %v107_v41 }
 0x18d   :  { %v176_v43 = vpop.eup %175 }
 0x18e   :  { %v109_v44 = vmul.f32 %v174_v37, %v108_v42  ;;  %v115_v45 = vmul.f32 %v176_v43, %v103_v38  ;;  %vm121_vm5 = vweird.f32 %v176_v43 }
 0x18f   :  { %vm122_vm8 = vmor %vm120_vm7, %vm121_vm5 }
 0x190   :  { %v113_v47 = vsel %vm112_vm4, %v174_v37, %v109_v44  ;;  %v116_v48 = vmul.f32 %v176_v43, %v115_v45 }
 0x191   :  { %v124_v50 = vmul.f32 %v113_v47, %v90_v24 }
 0x192   :  { %v117_v51 = vmul.f32 0.5, %v116_v48 }
 0x193   :  { %v130_v52 = vmul.f32 %v169_v46, %v124_v50 }
 0x194   :  { %v118_v53 = vsub.f32 1.5, %v117_v51 }
 0x195   :  { %v136_v54 = vadd.f32 %v170_v49, %v130_v52 }
 0x196   :  { %v119_v55 = vmul.f32 %v176_v43, %v118_v53 }
 0x197   :  { %v138_v56 = vpack.c.bf16 %v136_v54, %v136_v54 }
 0x198   :  { %v123_v57 = vsel %vm122_vm8, %v176_v43, %v119_v55 }
 0x199   :  { %141 = vst.msk [vmem:[%s251_s6] sm:$0xf] %vm140_vm6, %v138_v56  ;;  %v125_v58 = vmul.f32 %v123_v57, %v91_v29 }
 0x19b   :  { %v131_v59 = vmul.f32 %v169_v46, %v125_v58 }
 0x19d   :  { %v137_v60 = vadd.f32 %v170_v49, %v131_v59 }
 0x19f   :  { %v139_v61 = vpack.c.bf16 %v137_v60, %v137_v60 }
 0x1a1   :  { %142 = vst.msk [vmem:[%s251_s6 + $0x4] sm:$0xf] %vm140_vm6, %v139_v61 }

// kernel: _lambda_.17
= control target key start
LH: loop header
LB: loop body
LE: loop exit
PB: predicated region body
PF: predicated region fallthrough
CT: control target
= control target key end

     0   :  { %vm42_vm0 = vcmask 261120   ;;  %vm80_vm1 = vcmask 519168   ;;  %s146_s1 = inlined_call_operand.vmem [shape: bf16[32,64], index: 1, kind: input, shape index: {}]   ;;  %s147_s2 = inlined_call_operand.vmem [shape: f32[1,64], index: 2, kind: input, shape index: {}]   ;;  %s148_s0 = inlined_call_operand.vmem [shape: bf16[16,32], index: 0, kind: input, shape index: {}]   ;;  %s149_s3 = inlined_call_operand.vmem [shape: bf16[16,64], index: 3, kind: output, shape index: {}]  }
   0x1   :  { %v102_v0 = vld [vmem:[%s146_s1 + $0x8] sm:$0xff]  ;;  %v101_v1 = vld [vmem:[%s146_s1] sm:$0xff] }
   0x2   :  { %52 = vmatpush.bf16.msra.mxu0 %v102_v0  ;;  %v100_v2 = vld [vmem:[%s148_s0] sm:$0xff] }
   0x3   :  { %v103_v3 = vld [vmem:[%s147_s2] ss:$0 sm:$0xff] }
   0x6   :  { %53 = vmatpush.bf16.msra.mxu0 %v101_v1 }
   0x9   :  { %99 = vmatmul.msk.bf16.vlgmr.msra.gmra.mxu0 %vm42_vm0, %v100_v2 }
  0x86   :  { %v55_v4 = vpop.f32.mrf.mxu0 }
  0x87   :  { %v56_v5 = vadd.f32 %v103_v3, %v55_v4 }
  0x89   :  { %v60_v6 = vmul.f32 %v56_v5, %v56_v5 }
  0x8b   :  { %v62_v7 = vmul.f32 %v60_v6, %v56_v5 }
  0x8d   :  { %v64_v8 = vmul.f32 0.044715, %v62_v7 }
  0x8e   :  { %v57_v9 = vpop.f32.mrf.mxu0 }
  0x8f   :  { %v66_v10 = vadd.f32 %v64_v8, %v56_v5  ;;  %v58_v11 = vadd.f32 %v103_v3, %v57_v9 }
  0x91   :  { %v68_v12 = vmul.f32 0.7978846, %v66_v10  ;;  %v61_v13 = vmul.f32 %v58_v11, %v58_v11 }
  0x93   :  { %104 = vtanh.f32 %v68_v12  ;;  %v63_v14 = vmul.f32 %v61_v13, %v58_v11 }
  0x95   :  { %v65_v15 = vmul.f32 0.044715, %v63_v14 }
  0x97   :  { %v67_v16 = vadd.f32 %v65_v15, %v58_v11 }
  0x99   :  { %v105_v17 = vpop.eup %104  ;;  %v69_v18 = vmul.f32 0.7978846, %v67_v16 }
  0x9a   :  { %v72_v19 = vadd.f32 1.0, %v105_v17 }
  0x9b   :  { %106 = vtanh.f32 %v69_v18 }
  0x9c   :  { %v74_v20 = vmul.f32 0.5, %v72_v19 }
  0x9e   :  { %v76_v21 = vmul.f32 %v74_v20, %v56_v5 }
  0xa0   :  { %v78_v22 = vpack.c.bf16 %v76_v21, %v76_v21 }
  0xa1   :  { %v107_v23 = vpop.eup %106 }
  0xa2   :  { %81 = vst.msk [vmem:[%s149_s3] sm:$0xf] %vm80_vm1, %v78_v22  ;;  %v73_v24 = vadd.f32 1.0, %v107_v23 }
  0xa4   :  { %v75_v25 = vmul.f32 0.5, %v73_v24 }
  0xa6   :  { %v77_v26 = vmul.f32 %v75_v25, %v58_v11 }
  0xa8   :  { %v79_v27 = vpack.c.bf16 %v77_v26, %v77_v26 }
  0xaa   :  { %82 = vst.msk [vmem:[%s149_s3 + $0x4] sm:$0xf] %vm80_vm1, %v79_v27 }

// kernel: _lambda_.18
= control target key start
LH: loop header
LB: loop body
LE: loop exit
PB: predicated region body
PF: predicated region fallthrough
CT: control target
= control target key end

     0   :  { %vm67_vm0 = vcmask 523264   ;;  %vm91_vm1 = vcmask 261120   ;;  %v204_v17 = vmov 32.0   ;;  %vm157_vm7 = vcmask 257024   ;;  %s277_s1 = inlined_call_operand.vmem [shape: bf16[64,32], index: 1, kind: input, shape index: {}]   ;;  %s278_s2 = inlined_call_operand.vmem [shape: f32[1,32], index: 2, kind: input, shape index: {}]   ;;  %s279_s0 = inlined_call_operand.vmem [shape: bf16[16,64], index: 0, kind: input, shape index: {}]   ;;  %s280_s3 = inlined_call_operand.vmem [shape: bf16[16,32], index: 3, kind: input, shape index: {}]   ;;  %s281_s4 = inlined_call_operand.vmem [shape: f32[1,32], index: 4, kind: input, shape index: {}]   ;;  %s282_s5 = inlined_call_operand.vmem [shape: f32[1,32], index: 5, kind: input, shape index: {}]   ;;  %s283_s6 = inlined_call_operand.vmem [shape: bf16[16,32], index: 6, kind: output, shape index: {}]  }
   0x1   :  { %v189_v0 = vld [vmem:[%s277_s1 + $0x18] sm:$0xff]  ;;  %v188_v1 = vld [vmem:[%s277_s1 + $0x10] sm:$0xff]  ;;  %v187_v2 = vld [vmem:[%s277_s1 + $0x8] sm:$0xff]  ;;  %198 = vrcp.f32 %v204_v17 }
   0x2   :  { %75 = vmatpush.bf16.msra.mxu0 %v189_v0  ;;  %v186_v3 = vld [vmem:[%s277_s1] sm:$0xff] }
   0x3   :  { %v185_v4 = vld [vmem:[%s279_s0] sm:$0xff] }
   0x4   :  { %v191_v5 = vld [vmem:[%s280_s3] sm:$0xff]  }
   0x5   :  { %v195_v6 = vld [vmem:[%s278_s2] ss:$0 sm:$0xff]  ;;  %v192_v7 = vunpack.c.l.bf16 %v191_v5  ;;  %v193_v12 = vunpack.c.h.bf16 %v191_v5 }
   0x6   :  { %76 = vmatpush.bf16.msra.mxu0 %v188_v1  ;;  %v196_v48 = vld [vmem:[%s281_s4] ss:$0 sm:$0xff] }
   0x7   :  { %v199_v18 = vpop.eup %198  ;;  %v197_v51 = vld [vmem:[%s282_s5] ss:$0 sm:$0xff] }
   0x8   :  { %v99_v19 = vmul.f32 32.0, %v199_v18  ;;  %vm103_vm2 = vweird.f32 %v199_v18 }
   0xa   :  { %77 = vmatpush.bf16.msra.mxu0 %v187_v2  ;;  %v100_v20 = vsub.f32 1.0, %v99_v19 }
   0xc   :  { %v101_v21 = vmul.f32 %v199_v18, %v100_v20 }
   0xe   :  { %78 = vmatpush.bf16.msra.mxu0 %v186_v3  ;;  %v102_v22 = vadd.f32 %v199_v18, %v101_v21 }
  0x10   :  { %v104_v23 = vsel %vm103_vm2, %v199_v18, %v102_v22 }
  0x11   :  { %184 = vmatmul.msk.bf16.vlgmr.msra.gmra.mxu0 %vm67_vm0, %v185_v4 }
  0x8e   :  { %v80_v8 = vpop.f32.mrf.mxu0 }
  0x8f   :  { %v81_v9 = vadd.f32 %v195_v6, %v80_v8 }
  0x91   :  { %v89_v10 = vadd.f32 %v192_v7, %v81_v9 }
  0x93   :  { %v92_v11 = vsel %vm91_vm1, %v89_v10, 0.0 }
  0x94   :  { %93 = vadd.xlane.f32.xlu0 %v92_v11 }
  0x96   :  { %v82_v13 = vpop.f32.mrf.mxu0 }
  0x97   :  { %v83_v14 = vadd.f32 %v195_v6, %v82_v13 }
  0x99   :  { %v90_v15 = vadd.f32 %v193_v12, %v83_v14 }
  0x9b   :  { %v95_v16 = vsel %vm91_vm1, %v90_v15, 0.0 }
  0x9c   :  { %96 = vadd.xlane.f32.xlu0 %v95_v16 }
 0x107   :  { %v94_v24 = vpop.xlane.xlu0 %93 }
 0x108   :  { %v105_v25 = vmul.f32 %v104_v23, %v94_v24 }
 0x10a   :  { %v107_v26 = vsub.f32 %v89_v10, %v105_v25 }
 0x10c   :  { %v109_v27 = vmul.f32 %v107_v26, %v107_v26 }
 0x10e   :  { %v111_v28 = vsel %vm91_vm1, %v109_v27, 0.0 }
 0x10f   :  { %112 = vadd.xlane.f32.xlu1 %v111_v28  ;;  %v97_v29 = vpop.xlane.xlu0 %96 }
 0x110   :  { %v106_v30 = vmul.f32 %v104_v23, %v97_v29 }
 0x112   :  { %v108_v31 = vsub.f32 %v90_v15, %v106_v30 }
 0x114   :  { %v110_v32 = vmul.f32 %v108_v31, %v108_v31 }
 0x116   :  { %v114_v33 = vsel %vm91_vm1, %v110_v32, 0.0 }
 0x117   :  { %115 = vadd.xlane.f32.xlu1 %v114_v33 }
 0x182   :  { %v113_v34 = vpop.xlane.xlu1 %112 }
 0x183   :  { %v117_v35 = vmul.f32 %v113_v34, %v104_v23 }
 0x185   :  { %v119_v36 = vadd.f32 1e-05, %v117_v35 }
 0x187   :  { %200 = vrsqrt.f32 %v119_v36  ;;  %vm127_vm4 = vweird.f32 %v119_v36 }
 0x18a   :  { %v116_v37 = vpop.xlane.xlu1 %115 }
 0x18b   :  { %v118_v38 = vmul.f32 %v116_v37, %v104_v23 }
 0x18d   :  { %v201_v39 = vpop.eup %200  ;;  %v120_v40 = vadd.f32 1e-05, %v118_v38 }
 0x18e   :  { %v122_v41 = vmul.f32 %v201_v39, %v119_v36  ;;  %vm128_vm3 = vweird.f32 %v201_v39 }
 0x18f   :  { %202 = vrsqrt.f32 %v120_v40  ;;  %vm129_vm5 = vmor %vm127_vm4, %vm128_vm3  ;;  %vm137_vm8 = vweird.f32 %v120_v40 }
 0x190   :  { %v123_v42 = vmul.f32 %v201_v39, %v122_v41 }
 0x192   :  { %v124_v43 = vmul.f32 0.5, %v123_v42 }
 0x194   :  { %v125_v44 = vsub.f32 1.5, %v124_v43 }
 0x195   :  { %v203_v45 = vpop.eup %202 }
 0x196   :  { %v126_v46 = vmul.f32 %v201_v39, %v125_v44  ;;  %v132_v47 = vmul.f32 %v203_v45, %v120_v40  ;;  %vm138_vm6 = vweird.f32 %v203_v45 }
 0x197   :  { %vm139_vm9 = vmor %vm137_vm8, %vm138_vm6 }
 0x198   :  { %v130_v49 = vsel %vm129_vm5, %v201_v39, %v126_v46  ;;  %v133_v50 = vmul.f32 %v203_v45, %v132_v47 }
 0x199   :  { %v141_v52 = vmul.f32 %v130_v49, %v107_v26 }
 0x19a   :  { %v134_v53 = vmul.f32 0.5, %v133_v50 }
 0x19b   :  { %v147_v54 = vmul.f32 %v196_v48, %v141_v52 }
 0x19c   :  { %v135_v55 = vsub.f32 1.5, %v134_v53 }
 0x19d   :  { %v153_v56 = vadd.f32 %v197_v51, %v147_v54 }
 0x19e   :  { %v136_v57 = vmul.f32 %v203_v45, %v135_v55 }
 0x19f   :  { %v155_v58 = vpack.c.bf16 %v153_v56, %v153_v56 }
 0x1a0   :  { %v140_v59 = vsel %vm139_vm9, %v203_v45, %v136_v57 }
 0x1a1   :  { %158 = vst.msk [vmem:[%s283_s6] sm:$0xf] %vm157_vm7, %v155_v58  ;;  %v142_v60 = vmul.f32 %v140_v59, %v108_v31 }
 0x1a3   :  { %v148_v61 = vmul.f32 %v196_v48, %v142_v60 }
 0x1a5   :  { %v154_v62 = vadd.f32 %v197_v51, %v148_v61 }
 0x1a7   :  { %v156_v63 = vpack.c.bf16 %v154_v62, %v154_v62 }
 0x1a9   :  { %159 = vst.msk [vmem:[%s283_s6 + $0x4] sm:$0xf] %vm157_vm7, %v156_v63 }

// kernel: _lambda_.25
= control target key start
LH: loop header
LB: loop body
LE: loop exit
PB: predicated region body
PF: predicated region fallthrough
CT: control target
= control target key end

     0   :  { %s166_s0 = inlined_call_operand.vmem [shape: bf16[16,32], index: 0, kind: input, shape index: {}]   ;;  %s167_s1 = inlined_call_operand.vmem [shape: bf16[32,64], index: 1, kind: input, shape index: {}]   ;;  %s168_s2 = inlined_call_operand.vmem [shape: f32[1,64], index: 2, kind: input, shape index: {}]   ;;  %s169_s3 = inlined_call_operand.hbm [shape: f32[16,64], index: 3, kind: output, shape index: {}]  }
   0x1   :  { %v97_v0 = vld [vmem:[%s167_s1 + $0x8] sm:$0xff] }
   0x2   :  { %8 = vsyncpa [#allocation3], 0  ;;  %53 = vmatpush.bf16.msra.mxu0 %v97_v0  ;;  %v96_v1 = vld [vmem:[%s167_s1] sm:$0xff]  ;;  %vm43_vm0 = vcmask 261120   ;;  %vm61_vm1 = vcmask 523264   ;;  %s128_s20 = smov [#allocation2]  }
   0x3   :  { %v95_v2 = vld [vmem:[%s166_s0] sm:$0xff]  ;;  %s68_s21 = sshll.u32 %s128_s20, 4  ;;  %s70_s1 = sshll.u32 %s169_s3, 4  ;;  %s69_s21 = int_to_ptr.vmem [resolvable:$true] %s68_s21  ;;  %s71_s1 = int_to_ptr.hbm [resolvable:$true] %s70_s1 }
   0x4   :  { %v101_v3 = vld [vmem:[%s168_s2] ss:$0 sm:$0xff]  ;;  %s129_s0 = smov 128   ;;  %s130_s24 = smov 8  }
   0x6   :  { %54 = vmatpush.bf16.msra.mxu0 %v96_v1 }
   0x9   :  { %94 = vmatmul.msk.bf16.vlgmr.msra.gmra.mxu0 %vm43_vm0, %v95_v2 }
  0x86   :  { %v56_v4 = vpop.f32.mrf.mxu0 }
  0x87   :  { %v57_v5 = vadd.f32 %v101_v3, %v56_v4 }
  0x89   :  { %62 = vst.msk [vmem:[#allocation2] sm:$0xff] %vm61_vm1, %v57_v5 }
  0x8e   :  { %v58_v6 = vpop.f32.mrf.mxu0 }
  0x8f   :  { %v59_v7 = vadd.f32 %v101_v3, %v58_v6 }
  0x91   :  { %63 = vst.msk [vmem:[#allocation2 + $0x8] sm:$0xff] %vm61_vm1, %v59_v7 }
  0x92   :  { %76 = dma.vmem_to_hbm [thread:$0]  %s69_s21, 256, %s71_s1, [#allocation3], %s129_s0, %s129_s0, %s130_s24  }
  0x93   :  { %126 = dma.done.wait [#allocation3], 256  }
  0x94   :  { %127 = vsyncadd [#allocation3], 4294967040 }
  0x95   :  { %81 = vsyncpa [#allocation3], 1 }

// kernel: _lambda_.24
= control target key start
LH: loop header
LB: loop body
LE: loop exit
PB: predicated region body
PF: predicated region fallthrough
CT: control target
= control target key end

     0   :  { %vm56_vm4 = vcmask 261120   ;;  %v189_v36 = vmov 32.0   ;;  %vm157_vm10 = vcmask 257024   ;;  %s252_s1 = inlined_call_operand.vmem [shape: bf16[32,32], index: 1, kind: input, shape index: {}]   ;;  %s253_s0 = inlined_call_operand.vmem [shape: bf16[16,32], index: 0, kind: input, shape index: {}]   ;;  %s254_s2 = inlined_call_operand.vmem [shape: f32[1,32], index: 2, kind: input, shape index: {}]   ;;  %s255_s3 = inlined_call_operand.vmem [shape: f32[1,32], index: 3, kind: input, shape index: {}]   ;;  %s256_s4 = inlined_call_operand.vmem [shape: f32[1,32], index: 4, kind: input, shape index: {}]   ;;  %s257_s5 = inlined_call_operand.vmem [shape: bf16[16,32], index: 5, kind: output, shape index: {}]  }
   0x1   :  { %v174_v0 = vld [vmem:[%s252_s1 + $0x8] sm:$0xff]  ;;  %v21_v1 = vld [vmem:[%s253_s0] sm:$0xf]  ;;  %v22_v2 = vld [vmem:[%s253_s0 + $0x4] sm:$0xf] }
   0x2   :  { %v23_v3 = vunpack.c.l.bf16 %v21_v1  ;;  %66 = vmatpush.bf16.msra.mxu0 %v174_v0  ;;  %v173_v4 = vld [vmem:[%s252_s1] sm:$0xff]  ;;  %v24_v5 = vunpack.c.l.bf16 %v22_v2 }
   0x3   :  { %v176_v11 = vld [vmem:[%s254_s2] ss:$0 sm:$0xff] }
   0x4   :  { %vm25_vm0 = vcmp.ne.f32.partialorder %v23_v3, %v23_v3  ;;  %vm26_vm1 = vcmp.ne.f32.partialorder %v24_v5, %v24_v5  ;;  %v177_v3 = vld [vmem:[%s255_s3] ss:$0 sm:$0xff] }
   0x5   :  { %vm27_vm2 = vmpackc.low %vm25_vm0, %vm25_vm0 }
   0x6   :  { %vm28_vm3 = vmpackc.low %vm26_vm1, %vm26_vm1  ;;  %v29_v6 = vsel %vm27_vm2, 0, %v21_v1  ;;  %67 = vmatpush.bf16.msra.mxu0 %v173_v4 }
   0x7   :  { %v30_v7 = vsel %vm28_vm3, 0, %v22_v2  ;;  %v41_v8 = vunpack.c.l.b16 %v29_v6  ;;  %v178_v6 = vld [vmem:[%s256_s4] ss:$0 sm:$0xff] }
   0x8   :  { %v42_v9 = vunpack.c.l.b16 %v30_v7 }
   0xa   :  { %v43_v10 = vpack.c.b16 %v42_v9, %v41_v8 }
   0xc   :  { %172 = vmatmul.msk.bf16.vlgmr.msra.gmra.mxu0 %vm56_vm4, %v43_v10 }
  0x89   :  { %v69_v12 = vpop.f32.mrf.mxu0 }
  0x8a   :  { %v70_v13 = vadd.f32 %v176_v11, %v69_v12 }
  0x8c   :  { %v74_v14 = vmul.f32 %v70_v13, %v70_v13 }
  0x8e   :  { %v76_v15 = vmul.f32 %v74_v14, %v70_v13 }
  0x90   :  { %v78_v16 = vmul.f32 0.044715, %v76_v15 }
  0x91   :  { %v71_v17 = vpop.f32.mrf.mxu0 }
  0x92   :  { %v72_v18 = vadd.f32 %v176_v11, %v71_v17  ;;  %v80_v19 = vadd.f32 %v78_v16, %v70_v13 }
  0x94   :  { %v75_v20 = vmul.f32 %v72_v18, %v72_v18  ;;  %v82_v21 = vmul.f32 0.7978846, %v80_v19 }
  0x96   :  { %v77_v22 = vmul.f32 %v75_v20, %v72_v18  ;;  %179 = vtanh.f32 %v82_v21 }
  0x98   :  { %v79_v23 = vmul.f32 0.044715, %v77_v22 }
  0x9a   :  { %v81_v24 = vadd.f32 %v79_v23, %v72_v18 }
  0x9c   :  { %v180_v25 = vpop.eup %179  ;;  %v83_v26 = vmul.f32 0.7978846, %v81_v24 }
  0x9d   :  { %v86_v27 = vadd.f32 1.0, %v180_v25 }
  0x9e   :  { %181 = vtanh.f32 %v83_v26 }
  0x9f   :  { %v88_v28 = vmul.f32 0.5, %v86_v27  ;;  %183 = vrcp.f32 %v189_v36 }
  0xa1   :  { %v90_v29 = vmul.f32 %v88_v28, %v70_v13 }
  0xa3   :  { %v92_v30 = vsel %vm56_vm4, %v90_v29, 0.0 }
  0xa4   :  { %v182_v31 = vpop.eup %181  ;;  %93 = vadd.xlane.f32.xlu0 %v92_v30 }
  0xa5   :  { %v87_v32 = vadd.f32 1.0, %v182_v31  ;;  %v184_v37 = vpop.eup %183 }
  0xa6   :  { %v99_v38 = vmul.f32 32.0, %v184_v37  ;;  %vm103_vm5 = vweird.f32 %v184_v37 }
  0xa7   :  { %v89_v33 = vmul.f32 0.5, %v87_v32 }
  0xa8   :  { %v100_v39 = vsub.f32 1.0, %v99_v38 }
  0xa9   :  { %v91_v34 = vmul.f32 %v89_v33, %v72_v18 }
  0xaa   :  { %v101_v40 = vmul.f32 %v184_v37, %v100_v39 }
  0xab   :  { %v95_v35 = vsel %vm56_vm4, %v91_v34, 0.0 }
  0xac   :  { %96 = vadd.xlane.f32.xlu0 %v95_v35  ;;  %v102_v41 = vadd.f32 %v184_v37, %v101_v40 }
  0xae   :  { %v104_v42 = vsel %vm103_vm5, %v184_v37, %v102_v41 }
 0x117   :  { %v94_v43 = vpop.xlane.xlu0 %93 }
 0x118   :  { %v105_v44 = vmul.f32 %v104_v42, %v94_v43 }
 0x11a   :  { %v107_v45 = vsub.f32 %v90_v29, %v105_v44 }
 0x11c   :  { %v109_v46 = vmul.f32 %v107_v45, %v107_v45 }
 0x11e   :  { %v111_v47 = vsel %vm56_vm4, %v109_v46, 0.0 }
 0x11f   :  { %112 = vadd.xlane.f32.xlu1 %v111_v47  ;;  %v97_v48 = vpop.xlane.xlu0 %96 }
 0x120   :  { %v106_v49 = vmul.f32 %v104_v42, %v97_v48 }
 0x122   :  { %v108_v50 = vsub.f32 %v91_v34, %v106_v49 }
 0x124   :  { %v110_v51 = vmul.f32 %v108_v50, %v108_v50 }
 0x126   :  { %v114_v52 = vsel %vm56_vm4, %v110_v51, 0.0 }
 0x127   :  { %115 = vadd.xlane.f32.xlu1 %v114_v52 }
 0x192   :  { %v113_v53 = vpop.xlane.xlu1 %112 }
 0x193   :  { %v117_v54 = vmul.f32 %v113_v53, %v104_v42 }
 0x195   :  { %v119_v55 = vadd.f32 1e-05, %v117_v54 }
 0x197   :  { %185 = vrsqrt.f32 %v119_v55  ;;  %vm127_vm7 = vweird.f32 %v119_v55 }
 0x19a   :  { %v116_v56 = vpop.xlane.xlu1 %115 }
 0x19b   :  { %v118_v57 = vmul.f32 %v116_v56, %v104_v42 }
 0x19d   :  { %v186_v58 = vpop.eup %185  ;;  %v120_v59 = vadd.f32 1e-05, %v118_v57 }
 0x19e   :  { %v122_v60 = vmul.f32 %v186_v58, %v119_v55  ;;  %vm128_vm6 = vweird.f32 %v186_v58 }
 0x19f   :  { %187 = vrsqrt.f32 %v120_v59  ;;  %vm129_vm8 = vmor %vm127_vm7, %vm128_vm6  ;;  %vm137_vm11 = vweird.f32 %v120_v59 }
 0x1a0   :  { %v123_v61 = vmul.f32 %v186_v58, %v122_v60 }
 0x1a2   :  { %v124_v62 = vmul.f32 0.5, %v123_v61 }
 0x1a4   :  { %v125_v63 = vsub.f32 1.5, %v124_v62 }
 0x1a5   :  { %v188_v0 = vpop.eup %187 }
 0x1a6   :  { %v126_v1 = vmul.f32 %v186_v58, %v125_v63  ;;  %v132_v2 = vmul.f32 %v188_v0, %v120_v59  ;;  %vm138_vm9 = vweird.f32 %v188_v0 }
 0x1a7   :  { %vm139_vm12 = vmor %vm137_vm11, %vm138_vm9 }
 0x1a8   :  { %v130_v4 = vsel %vm129_vm8, %v186_v58, %v126_v1  ;;  %v133_v5 = vmul.f32 %v188_v0, %v132_v2 }
 0x1a9   :  { %v141_v7 = vmul.f32 %v130_v4, %v107_v45 }
 0x1aa   :  { %v134_v8 = vmul.f32 0.5, %v133_v5 }
 0x1ab   :  { %v147_v9 = vmul.f32 %v177_v3, %v141_v7 }
 0x1ac   :  { %v135_v10 = vsub.f32 1.5, %v134_v8 }
 0x1ad   :  { %v153_v11 = vadd.f32 %v178_v6, %v147_v9 }
 0x1ae   :  { %v136_v12 = vmul.f32 %v188_v0, %v135_v10 }
 0x1af   :  { %v155_v13 = vpack.c.bf16 %v153_v11, %v153_v11 }
 0x1b0   :  { %v140_v14 = vsel %vm139_vm12, %v188_v0, %v136_v12 }
 0x1b1   :  { %158 = vst.msk [vmem:[%s257_s5] sm:$0xf] %vm157_vm10, %v155_v13  ;;  %v142_v15 = vmul.f32 %v140_v14, %v108_v50 }
 0x1b3   :  { %v148_v16 = vmul.f32 %v177_v3, %v142_v15 }
 0x1b5   :  { %v154_v17 = vadd.f32 %v178_v6, %v148_v16 }
 0x1b7   :  { %v156_v18 = vpack.c.bf16 %v154_v17, %v154_v17 }
 0x1b9   :  { %159 = vst.msk [vmem:[%s257_s5 + $0x4] sm:$0xf] %vm157_vm10, %v156_v18 }

</bundles_post_ra>
